<compile_context>
chip_gen: v7x
topology: tpu7x:2x2x1
jax: 0.10.0
libtpu: 0.0.40
codegen_flags: <defaults>
</compile_context>

<pallas_src>
import math
from functools import partial

import jax
import jax.numpy as jnp
from jax.experimental import pallas as pl
from jax.experimental.pallas import tpu as pltpu


# ----------------------------- in-kernel helpers -----------------------------

def _gelu(x):
    # tanh-form GELU (EUP transcendental). |err| vs torch's exact erf GELU is
    # ~1e-3, below the bf16-matmul noise floor adopted for the MXU path.
    c = math.sqrt(2.0 / math.pi)
    return 0.5 * x * (1.0 + jnp.tanh(c * (x + 0.044715 * x * x * x)))


def _layernorm(x, g, b, eps=1e-5):
    mu = jnp.mean(x, axis=-1, keepdims=True)
    var = jnp.mean(jnp.square(x - mu), axis=-1, keepdims=True)
    return (x - mu) * jax.lax.rsqrt(var + eps) * g + b


def _softmax(x):
    # approx reciprocal is inference-grade; swap for an exact divide if this
    # kernel is ever reused for training / logit-parity checks.
    m = jnp.max(x, axis=-1, keepdims=True)
    e = jnp.exp(x - m)
    return e * pl.reciprocal(jnp.sum(e, axis=-1, keepdims=True), approx=True)


def _dot(a, b):        # (m,k) x (k,n) -> (m,n), fp32 accumulate
    return jax.lax.dot_general(a, b, (((1,), (0,)), ((), ())),
                               preferred_element_type=jnp.float32)


def _dot_nt(a, b):     # (m,k) x (n,k) -> (m,n)
    return jax.lax.dot_general(a, b, (((1,), (1,)), ((), ())),
                               preferred_element_type=jnp.float32)


def _bdot(a, b):       # (B,m,k) x (B,k,n) -> (B,m,n)
    return jax.lax.dot_general(a, b, (((2,), (1,)), ((0,), (0,))),
                               preferred_element_type=jnp.float32)


def _bdot_nt(a, b):    # (B,m,k) x (B,n,k) -> (B,m,n)
    return jax.lax.dot_general(a, b, (((2,), (2,)), ((0,), (0,))),
                               preferred_element_type=jnp.float32)


# --------------------------------- kernel ------------------------------------

def _denoiser_layers_kernel(x0_ref, cond_ref, ln_ref, wself_ref, wcross_ref,
                            mw1_ref, mb1_ref, mw2_ref, owt_ref, ob_ref,
                            o_ref, x_st, *, n_heads):
    bf16 = jnp.bfloat16
    layer = pl.program_id(1)
    Bt, S, E = x0_ref.shape
    H = n_heads
    dh = E // H
    BtS = Bt * S

    # ---- layer 0: load the (already embedded) batch tile into resident VMEM --
    @pl.when(layer == 0)
    def _init():
        x_st[...] = x0_ref[...].reshape(BtS, E)

    x = x_st[...]                                  # (Bt*S, E) fp32 residual
    cond = cond_ref[...].reshape(Bt * 2, E)        # (Bt*2, E) fp32

    ln = ln_ref[...]                               # (7, E) packed LN params
    g1, b1, g2, b2, g3, b3, mlp_b2 = (ln[i:i + 1] for i in range(7))

    def attend(q_all, kv_all, Tk):
        # q_all: (Bt*S, E), kv_all: (Bt*Tk, 2E) laid out [k | v], head-blocked
        # columns.  Heads loop is static; batch is the dot_general batch dim.
        outs = []
        for h in range(H):
            q = q_all[:, h * dh:(h + 1) * dh].reshape(Bt, S, dh).astype(bf16)
            k = kv_all[:, h * dh:(h + 1) * dh].reshape(Bt, Tk, dh).astype(bf16)
            v = kv_all[:, E + h * dh:E + (h + 1) * dh].reshape(Bt, Tk, dh).astype(bf16)
            p = _softmax(_bdot_nt(q, k))                    # (Bt, S, Tk) fp32
            outs.append(_bdot(p.astype(bf16), v))           # (Bt, S, dh) fp32
        # lane-axis merge of head outputs: layout op only, no extra MXU FLOPs.
        return jnp.concatenate(outs, axis=-1).reshape(BtS, E)

    # -- self attention (pre-norm, residual; no out-projection, as in tld) ----
    xn = _layernorm(x, g1, b1).astype(bf16)
    qkv = _dot(xn, wself_ref[...])                          # (Bt*S, 3E), one matmul
    x = x + attend(qkv[:, :E], qkv[:, E:], S)

    # -- cross attention against the 2-token conditioning embedding -----------
    xn = _layernorm(x, g2, b2).astype(bf16)
    wc = wcross_ref[...]                                    # (E, 3E) = [q | k | v]
    q_all = _dot(xn, wc[:, :E])                             # (Bt*S, E)
    kv_all = _dot(cond.astype(bf16), wc[:, E:])             # (Bt*2, 2E)
    x = x + attend(q_all, kv_all, 2)

    # -- MLP -------------------------------------------------------------------
    xn = _layernorm(x, g3, b3).astype(bf16)
    h1 = _gelu(_dot(xn, mw1_ref[...]) + mb1_ref[...])       # (Bt*S, Hm)
    x = x + _dot(h1.astype(bf16), mw2_ref[...]) + mlp_b2

    x_st[...] = x

    # -- last layer: fused out_proj, lane-dense (C, Bt*S) store ----------------
    @pl.when(layer == pl.num_programs(1) - 1)
    def _finalize():
        o_ref[0] = _dot_nt(owt_ref[...], x.astype(bf16)) + ob_ref[...]


# ------------------------------ parameter setup -------------------------------

def init_params(key, cfg):
    """fp32 parameters mirroring the torch module layout."""
    E = cfg['embed_dim']
    C = cfg['n_channels']
    F = cfg['noise_embed_dims']
    Tt = cfg['text_emb_size']
    Hm = cfg['mlp_multiplier'] * E
    keys = iter(jax.random.split(key, 64))

    def dense(fan_in, fan_out):
        w = jax.random.normal(next(keys), (fan_in, fan_out), jnp.float32) / math.sqrt(fan_in)
        b = jax.random.normal(next(keys), (1, fan_out), jnp.float32) * 0.02
        return w, b

    p = {}
    p['f_w1'], p['f_b1'] = dense(F, E)            # fourier_feats Linear(F,E)
    p['f_w2'], p['f_b2'] = dense(E, E)            # fourier_feats Linear(E,E)
    p['label_w'], p['label_b'] = dense(Tt, E)     # label_proj
    p['norm_g'] = jnp.ones((1, E), jnp.float32)   # self.norm
    p['norm_b'] = jnp.zeros((1, E), jnp.float32)
    p['patch_w'], p['patch_b'] = dense(C, E)      # patch_embedding
    p['pos_embed'] = jax.random.normal(next(keys), (cfg['seq_len'], E), jnp.float32) * 0.02
    p['out_w'], p['out_b'] = dense(E, C)          # out_proj
    layers = []
    for _ in range(cfg['n_layers']):
        lp = {}
        for n in ('ln1', 'ln2', 'ln3'):
            lp[n + '_g'] = jnp.ones((1, E), jnp.float32)
            lp[n + '_b'] = jnp.zeros((1, E), jnp.float32)
        lp['qkv_w'], _ = dense(E, 3 * E)          # self-attn qkv, bias=False
        lp['q_w'], _ = dense(E, E)                # cross-attn q, bias=False
        lp['kv_w'], _ = dense(E, 2 * E)           # cross-attn kv, bias=False
        lp['mlp_w1'], lp['mlp_b1'] = dense(E, Hm)
        lp['mlp_w2'], lp['mlp_b2'] = dense(Hm, E)
        layers.append(lp)
    p['layers'] = layers
    return p


def _prepare_kernel_params(p, cfg):
    """Kernel-ready layout: bf16 matmul weights, fused QKV, coalesced slabs."""
    E, H = cfg['embed_dim'], cfg['n_heads']
    dh = E // H
    bf = jnp.bfloat16
    scale = 1.0 / math.sqrt(dh)     # folded into the q columns

    def per_layer(fn):
        return jnp.stack([fn(lp) for lp in p['layers']], axis=0)

    ln_pack = per_layer(lambda lp: jnp.concatenate(
        [lp['ln1_g'], lp['ln1_b'], lp['ln2_g'], lp['ln2_b'],
         lp['ln3_g'], lp['ln3_b'], lp['mlp_b2']], axis=0))                      # (L, 7, E)
    w_self = per_layer(lambda lp: jnp.concatenate(
        [lp['qkv_w'][:, :E] * scale, lp['qkv_w'][:, E:]], axis=1)).astype(bf)   # (L, E, 3E)
    w_cross = per_layer(lambda lp: jnp.concatenate(
        [lp['q_w'] * scale, lp['kv_w']], axis=1)).astype(bf)                    # (L, E, 3E)
    mlp_w1 = per_layer(lambda lp: lp['mlp_w1']).astype(bf)                      # (L, E, Hm)
    mlp_b1 = per_layer(lambda lp: lp['mlp_b1'])                                 # (L, 1, Hm)
    mlp_w2 = per_layer(lambda lp: lp['mlp_w2']).astype(bf)                      # (L, Hm, E)

    return dict(ln_pack=ln_pack, w_self=w_self, w_cross=w_cross,
                mlp_w1=mlp_w1, mlp_b1=mlp_b1, mlp_w2=mlp_w2,
                out_wt=jnp.transpose(p['out_w']).astype(bf),                    # (C, E)
                out_b=p['out_b'].reshape(-1, 1))                                # (C, 1)


# --------------------------------- forward ------------------------------------

def denoiser_forward(params, x, noise_level, label, cfg):
    B, C, S = x.shape
    E = cfg['embed_dim']
    L = cfg['n_layers']
    H = cfg['n_heads']
    F = cfg['noise_embed_dims']

    # ---- conditioning (tiny; fp32, exact erf GELU matching torch nn.GELU) ----
    half = F // 2
    speeds = 2.0 * math.pi * jnp.exp(
        jnp.linspace(math.log(1.0), math.log(1000.0), half)).astype(jnp.float32)
    nl = noise_level.reshape(B, 1).astype(jnp.float32)
    ff = jnp.concatenate([jnp.sin(speeds * nl), jnp.cos(speeds * nl)], axis=-1)  # (B, F)
    h0 = jax.nn.gelu(ff @ params['f_w1'] + params['f_b1'], approximate=False)
    noise_emb = h0 @ params['f_w2'] + params['f_b2']                             # (B, E)
    lab_emb = label.astype(jnp.float32) @ params['label_w'] + params['label_b']  # (B, E)
    cond = jnp.stack([noise_emb, lab_emb], axis=1)                               # (B, 2, E)
    mu = jnp.mean(cond, axis=-1, keepdims=True)
    var = jnp.mean(jnp.square(cond - mu), axis=-1, keepdims=True)
    cond = (cond - mu) * jax.lax.rsqrt(var + 1e-5) * params['norm_g'] + params['norm_b']

    # ---- patch embedding + positional embedding (tiny; fp32) -----------------
    x_t = jnp.transpose(x, (0, 2, 1)).astype(jnp.float32)                        # (B, S, C)
    x0 = x_t @ params['patch_w'] + params['patch_b'] + params['pos_embed'][:S]   # (B, S, E)

    kp = _prepare_kernel_params(params, cfg)

    # ---- batch tiling: fold Bt batch elements into the matmul M dimension ----
    Bt = B
    for cand in range(B, 0, -1):
        if B % cand == 0 and cand * S <= 1024:
            Bt = cand
            break
    nt = B // Bt

    def rep(arr):
        nd = arr.ndim
        return pl.BlockSpec(arr.shape, lambda b, l, _n=nd: (0,) * _n)

    def per_layer_spec(arr):
        blk = (None,) + tuple(arr.shape[1:])
        nrest = arr.ndim - 1
        return pl.BlockSpec(blk, lambda b, l, _n=nrest: (l,) + (0,) * _n)

    in_specs = [
        pl.BlockSpec((Bt, S, E), lambda b, l: (b, 0, 0)),        # x0 (used at l==0)
        pl.BlockSpec((Bt, 2, E), lambda b, l: (b, 0, 0)),        # cond
        per_layer_spec(kp['ln_pack']),
        per_layer_spec(kp['w_self']),
        per_layer_spec(kp['w_cross']),
        per_layer_spec(kp['mlp_w1']),
        per_layer_spec(kp['mlp_b1']),
        per_layer_spec(kp['mlp_w2']),
        rep(kp['out_wt']),
        rep(kp['out_b']),
    ]

    out_flat = pl.pallas_call(
        partial(_denoiser_layers_kernel, n_heads=H),
        out_shape=jax.ShapeDtypeStruct((nt, C, Bt * S), jnp.float32),
        grid=(nt, L),
        in_specs=in_specs,
        out_specs=pl.BlockSpec((1, C, Bt * S), lambda b, l: (b, 0, 0)),
        scratch_shapes=[pltpu.VMEM((Bt * S, E), jnp.float32)],   # resident activation
        compiler_params=pltpu.CompilerParams(
            dimension_semantics=("parallel", "arbitrary"),
            vmem_limit_bytes=32 * 1024 * 1024),
    )(x0, cond, kp['ln_pack'], kp['w_self'], kp['w_cross'],
      kp['mlp_w1'], kp['mlp_b1'], kp['mlp_w2'], kp['out_wt'], kp['out_b'])

    # un-fold the lane-dense (C, Bt*S) tiles back to (B, C, S) — wrapper glue.
    out = out_flat.reshape(nt, C, Bt, S).transpose(0, 2, 1, 3).reshape(B, C, S)
    return out


# ----------------------------------- main --------------------------------------

if __name__ == "__main__":
    cfg = dict(seq_len=16, noise_embed_dims=8, embed_dim=32, n_layers=2,
               mlp_multiplier=4, n_channels=4, text_emb_size=64, n_heads=4)
    key = jax.random.PRNGKey(0)
    kparams, kx, kn, kl = jax.random.split(key, 4)
    params = init_params(kparams, cfg)

    B = 2
    x = jax.random.normal(kx, (B, cfg['n_channels'], cfg['seq_len']), jnp.float32)
    noise_level = jax.random.uniform(kn, (B, 1), jnp.float32)
    label = jax.random.normal(kl, (B, cfg['text_emb_size']), jnp.float32)

    fwd = jax.jit(partial(denoiser_forward, cfg=cfg))
    out = fwd(params, x, noise_level, label)
    out = jax.block_until_ready(out)

    assert out.shape == (B, cfg['n_channels'], cfg['seq_len'])
    assert out.dtype == jnp.float32
    assert bool(jnp.all(jnp.isfinite(out)))
    print("KERNEL_OK")
</pallas_src>

<mosaic_0001>
module attributes {stable_mosaic.version = 11 : i64} {
  func.func @_denoiser_layers_kernel(%arg0: i32, %arg1: i32, %arg2: memref<2x16x32xf32, #tpu.memory_space<vmem>>, %arg3: memref<2x2x32xf32, #tpu.memory_space<vmem>>, %arg4: memref<1x7x32xf32, #tpu.memory_space<vmem>>, %arg5: memref<1x32x96xbf16, #tpu.memory_space<vmem>>, %arg6: memref<1x32x96xbf16, #tpu.memory_space<vmem>>, %arg7: memref<1x32x128xbf16, #tpu.memory_space<vmem>>, %arg8: memref<1x1x128xf32, #tpu.memory_space<vmem>>, %arg9: memref<1x128x32xbf16, #tpu.memory_space<vmem>>, %arg10: memref<4x32xbf16, #tpu.memory_space<vmem>>, %arg11: memref<4x1xf32, #tpu.memory_space<vmem>>, %arg12: memref<1x4x32xf32, #tpu.memory_space<vmem>>, %arg13: memref<32x32xf32, #tpu.memory_space<vmem>>) attributes {dimension_semantics = [#tpu.dimension_semantics<parallel>, #tpu.dimension_semantics<arbitrary>], iteration_bounds = array<i64: 1, 2>, scalar_prefetch = 0 : i64, scratch_operands = 1 : i64, tpu.core_type = #tpu.core_type<tc>, window_params = [{transform_indices = @transform_0, window_bounds = array<i64: 2, 16, 32>}, {transform_indices = @transform_1, window_bounds = array<i64: 2, 2, 32>}, {transform_indices = @transform_2, window_bounds = array<i64: 1, 7, 32>}, {transform_indices = @transform_3, window_bounds = array<i64: 1, 32, 96>}, {transform_indices = @transform_4, window_bounds = array<i64: 1, 32, 96>}, {transform_indices = @transform_5, window_bounds = array<i64: 1, 32, 128>}, {transform_indices = @transform_6, window_bounds = array<i64: 1, 1, 128>}, {transform_indices = @transform_7, window_bounds = array<i64: 1, 128, 32>}, {pipeline_mode = #tpu.pipeline_mode<synchronous>, transform_indices = @transform_8, window_bounds = array<i64: 4, 32>}, {pipeline_mode = #tpu.pipeline_mode<synchronous>, transform_indices = @transform_9, window_bounds = array<i64: 4, 1>}, {transform_indices = @transform_10, window_bounds = array<i64: 1, 4, 32>}]} {
    %c0_i32 = arith.constant 0 : i32
    %0 = arith.cmpi eq, %arg1, %c0_i32 : i32
    %1 = arith.extui %0 : i1 to i32
    %c0_i32_0 = arith.constant 0 : i32
    %2 = arith.cmpi ne, %1, %c0_i32_0 : i32
    scf.if %2 {
      %c0_81 = arith.constant 0 : index
      %c0_82 = arith.constant 0 : index
      %c0_83 = arith.constant 0 : index
      %309 = vector.load %arg2[%c0_81, %c0_82, %c0_83] : memref<2x16x32xf32, #tpu.memory_space<vmem>>, vector<2x16x32xf32>
      %310 = vector.shape_cast %309 : vector<2x16x32xf32> to vector<32x32xf32>
      %c0_84 = arith.constant 0 : index
      %c0_85 = arith.constant 0 : index
      %311 = vector.load %arg13[%c0_84, %c0_85] : memref<32x32xf32, #tpu.memory_space<vmem>>, vector<32x32xf32>
      tpu.vector_store %arg13[%c0_84, %c0_85], %310 {strides = array<i32>} : memref<32x32xf32, #tpu.memory_space<vmem>>, vector<32x32xf32>,
    } else {
    }
    %c0 = arith.constant 0 : index
    %c0_1 = arith.constant 0 : index
    %3 = vector.load %arg13[%c0, %c0_1] : memref<32x32xf32, #tpu.memory_space<vmem>>, vector<32x32xf32>
    %c0_2 = arith.constant 0 : index
    %c0_3 = arith.constant 0 : index
    %c0_4 = arith.constant 0 : index
    %4 = vector.load %arg3[%c0_2, %c0_3, %c0_4] : memref<2x2x32xf32, #tpu.memory_space<vmem>>, vector<2x2x32xf32>
    %5 = vector.shape_cast %4 : vector<2x2x32xf32> to vector<4x32xf32>
    %c0_5 = arith.constant 0 : index
    %c0_6 = arith.constant 0 : index
    %c0_7 = arith.constant 0 : index
    %6 = vector.load %arg4[%c0_5, %c0_6, %c0_7] : memref<1x7x32xf32, #tpu.memory_space<vmem>>, vector<1x7x32xf32>
    %7 = vector.shape_cast %6 : vector<1x7x32xf32> to vector<7x32xf32>
    %8 = vector.extract_strided_slice %7 {offsets = [0, 0], sizes = [1, 32], strides = [1, 1]} : vector<7x32xf32> to vector<1x32xf32>
    %9 = vector.extract_strided_slice %7 {offsets = [1, 0], sizes = [1, 32], strides = [1, 1]} : vector<7x32xf32> to vector<1x32xf32>
    %10 = vector.extract_strided_slice %7 {offsets = [2, 0], sizes = [1, 32], strides = [1, 1]} : vector<7x32xf32> to vector<1x32xf32>
    %11 = vector.extract_strided_slice %7 {offsets = [3, 0], sizes = [1, 32], strides = [1, 1]} : vector<7x32xf32> to vector<1x32xf32>
    %12 = vector.extract_strided_slice %7 {offsets = [4, 0], sizes = [1, 32], strides = [1, 1]} : vector<7x32xf32> to vector<1x32xf32>
    %13 = vector.extract_strided_slice %7 {offsets = [5, 0], sizes = [1, 32], strides = [1, 1]} : vector<7x32xf32> to vector<1x32xf32>
    %14 = vector.extract_strided_slice %7 {offsets = [6, 0], sizes = [1, 32], strides = [1, 1]} : vector<7x32xf32> to vector<1x32xf32>
    %cst = arith.constant dense<0.000000e+00> : vector<32xf32>
    %15 = vector.multi_reduction <add>, %3, %cst [1] : vector<32x32xf32> to vector<32xf32>
    %16 = vector.shape_cast %15 : vector<32xf32> to vector<32x1xf32>
    %cst_8 = arith.constant 3.200000e+01 : f32
    %17 = vector.broadcast %cst_8 : f32 to vector<32x1xf32>
    %18 = arith.divf %16, %17 : vector<32x1xf32>
    %19 = vector.broadcast %18 : vector<32x1xf32> to vector<32x32xf32>
    %20 = arith.subf %3, %19 : vector<32x32xf32>
    %21 = arith.mulf %20, %20 : vector<32x32xf32>
    %cst_9 = arith.constant dense<0.000000e+00> : vector<32xf32>
    %22 = vector.multi_reduction <add>, %21, %cst_9 [1] : vector<32x32xf32> to vector<32xf32>
    %23 = vector.shape_cast %22 : vector<32xf32> to vector<32x1xf32>
    %cst_10 = arith.constant 3.200000e+01 : f32
    %24 = vector.broadcast %cst_10 : f32 to vector<32x1xf32>
    %25 = arith.divf %23, %24 : vector<32x1xf32>
    %26 = vector.broadcast %18 : vector<32x1xf32> to vector<32x32xf32>
    %27 = arith.subf %3, %26 : vector<32x32xf32>
    %cst_11 = arith.constant 9.99999974E-6 : f32
    %28 = vector.broadcast %cst_11 : f32 to vector<32x1xf32>
    %29 = arith.addf %25, %28 : vector<32x1xf32>
    %30 = math.rsqrt %29 : vector<32x1xf32>
    %31 = vector.broadcast %30 : vector<32x1xf32> to vector<32x32xf32>
    %32 = arith.mulf %27, %31 : vector<32x32xf32>
    %33 = vector.broadcast %8 : vector<1x32xf32> to vector<32x32xf32>
    %34 = arith.mulf %32, %33 : vector<32x32xf32>
    %35 = vector.broadcast %9 : vector<1x32xf32> to vector<32x32xf32>
    %36 = arith.addf %34, %35 : vector<32x32xf32>
    %37 = arith.truncf %36 : vector<32x32xf32> to vector<32x32xbf16>
    %c0_12 = arith.constant 0 : index
    %c0_13 = arith.constant 0 : index
    %c0_14 = arith.constant 0 : index
    %38 = vector.load %arg5[%c0_12, %c0_13, %c0_14] : memref<1x32x96xbf16, #tpu.memory_space<vmem>>, vector<1x32x96xbf16>
    %39 = vector.shape_cast %38 : vector<1x32x96xbf16> to vector<32x96xbf16>
    %cst_15 = arith.constant dense<0.000000e+00> : vector<32x96xf32>
    %40 = tpu.matmul %37, %39, %cst_15 {dimension_numbers = #tpu.dot_dimension_numbers<[1], [0], [0], [1], [0, 0, 1, 1], [], []>} : vector<32x32xbf16>, vector<32x96xbf16>, vector<32x96xf32> -> vector<32x96xf32>
    %41 = vector.extract_strided_slice %40 {offsets = [0, 0], sizes = [32, 32], strides = [1, 1]} : vector<32x96xf32> to vector<32x32xf32>
    %42 = vector.extract_strided_slice %40 {offsets = [0, 32], sizes = [32, 64], strides = [1, 1]} : vector<32x96xf32> to vector<32x64xf32>
    %43 = vector.extract_strided_slice %41 {offsets = [0, 0], sizes = [32, 8], strides = [1, 1]} : vector<32x32xf32> to vector<32x8xf32>
    %44 = vector.shape_cast %43 : vector<32x8xf32> to vector<2x16x8xf32>
    %45 = arith.truncf %44 : vector<2x16x8xf32> to vector<2x16x8xbf16>
    %46 = vector.extract_strided_slice %42 {offsets = [0, 0], sizes = [32, 8], strides = [1, 1]} : vector<32x64xf32> to vector<32x8xf32>
    %47 = vector.shape_cast %46 : vector<32x8xf32> to vector<2x16x8xf32>
    %48 = arith.truncf %47 : vector<2x16x8xf32> to vector<2x16x8xbf16>
    %49 = vector.extract_strided_slice %42 {offsets = [0, 32], sizes = [32, 8], strides = [1, 1]} : vector<32x64xf32> to vector<32x8xf32>
    %50 = vector.shape_cast %49 : vector<32x8xf32> to vector<2x16x8xf32>
    %51 = arith.truncf %50 : vector<2x16x8xf32> to vector<2x16x8xbf16>
    %cst_16 = arith.constant dense<0.000000e+00> : vector<2x16x16xf32>
    %52 = tpu.matmul %45, %48, %cst_16 {dimension_numbers = #tpu.dot_dimension_numbers<[2], [2], [1], [1], [0, 0, 0, 1, 1, 1], [0], [0]>} : vector<2x16x8xbf16>, vector<2x16x8xbf16>, vector<2x16x16xf32> -> vector<2x16x16xf32>
    %cst_17 = arith.constant dense<0xFF800000> : vector<2x16xf32>
    %53 = vector.multi_reduction <maximumf>, %52, %cst_17 [2] : vector<2x16x16xf32> to vector<2x16xf32>
    %54 = vector.shape_cast %53 : vector<2x16xf32> to vector<2x16x1xf32>
    %55 = vector.broadcast %54 : vector<2x16x1xf32> to vector<2x16x16xf32>
    %56 = arith.subf %52, %55 : vector<2x16x16xf32>
    %57 = math.exp %56 : vector<2x16x16xf32>
    %cst_18 = arith.constant dense<0.000000e+00> : vector<2x16xf32>
    %58 = vector.multi_reduction <add>, %57, %cst_18 [2] : vector<2x16x16xf32> to vector<2x16xf32>
    %59 = vector.shape_cast %58 : vector<2x16xf32> to vector<2x16x1xf32>
    %60 = tpu.reciprocal %59 {approx = true} : vector<2x16x1xf32> -> vector<2x16x1xf32>
    %61 = vector.broadcast %60 : vector<2x16x1xf32> to vector<2x16x16xf32>
    %62 = arith.mulf %57, %61 : vector<2x16x16xf32>
    %63 = arith.truncf %62 : vector<2x16x16xf32> to vector<2x16x16xbf16>
    %cst_19 = arith.constant dense<0.000000e+00> : vector<2x16x8xf32>
    %64 = tpu.matmul %63, %51, %cst_19 {dimension_numbers = #tpu.dot_dimension_numbers<[2], [1], [1], [2], [0, 0, 0, 1, 1, 2], [0], [0]>} : vector<2x16x16xbf16>, vector<2x16x8xbf16>, vector<2x16x8xf32> -> vector<2x16x8xf32>
    %65 = vector.extract_strided_slice %41 {offsets = [0, 8], sizes = [32, 8], strides = [1, 1]} : vector<32x32xf32> to vector<32x8xf32>
    %66 = vector.shape_cast %65 : vector<32x8xf32> to vector<2x16x8xf32>
    %67 = arith.truncf %66 : vector<2x16x8xf32> to vector<2x16x8xbf16>
    %68 = vector.extract_strided_slice %42 {offsets = [0, 8], sizes = [32, 8], strides = [1, 1]} : vector<32x64xf32> to vector<32x8xf32>
    %69 = vector.shape_cast %68 : vector<32x8xf32> to vector<2x16x8xf32>
    %70 = arith.truncf %69 : vector<2x16x8xf32> to vector<2x16x8xbf16>
    %71 = vector.extract_strided_slice %42 {offsets = [0, 40], sizes = [32, 8], strides = [1, 1]} : vector<32x64xf32> to vector<32x8xf32>
    %72 = vector.shape_cast %71 : vector<32x8xf32> to vector<2x16x8xf32>
    %73 = arith.truncf %72 : vector<2x16x8xf32> to vector<2x16x8xbf16>
    %cst_20 = arith.constant dense<0.000000e+00> : vector<2x16x16xf32>
    %74 = tpu.matmul %67, %70, %cst_20 {dimension_numbers = #tpu.dot_dimension_numbers<[2], [2], [1], [1], [0, 0, 0, 1, 1, 1], [0], [0]>} : vector<2x16x8xbf16>, vector<2x16x8xbf16>, vector<2x16x16xf32> -> vector<2x16x16xf32>
    %cst_21 = arith.constant dense<0xFF800000> : vector<2x16xf32>
    %75 = vector.multi_reduction <maximumf>, %74, %cst_21 [2] : vector<2x16x16xf32> to vector<2x16xf32>
    %76 = vector.shape_cast %75 : vector<2x16xf32> to vector<2x16x1xf32>
    %77 = vector.broadcast %76 : vector<2x16x1xf32> to vector<2x16x16xf32>
    %78 = arith.subf %74, %77 : vector<2x16x16xf32>
    %79 = math.exp %78 : vector<2x16x16xf32>
    %cst_22 = arith.constant dense<0.000000e+00> : vector<2x16xf32>
    %80 = vector.multi_reduction <add>, %79, %cst_22 [2] : vector<2x16x16xf32> to vector<2x16xf32>
    %81 = vector.shape_cast %80 : vector<2x16xf32> to vector<2x16x1xf32>
    %82 = tpu.reciprocal %81 {approx = true} : vector<2x16x1xf32> -> vector<2x16x1xf32>
    %83 = vector.broadcast %82 : vector<2x16x1xf32> to vector<2x16x16xf32>
    %84 = arith.mulf %79, %83 : vector<2x16x16xf32>
    %85 = arith.truncf %84 : vector<2x16x16xf32> to vector<2x16x16xbf16>
    %cst_23 = arith.constant dense<0.000000e+00> : vector<2x16x8xf32>
    %86 = tpu.matmul %85, %73, %cst_23 {dimension_numbers = #tpu.dot_dimension_numbers<[2], [1], [1], [2], [0, 0, 0, 1, 1, 2], [0], [0]>} : vector<2x16x16xbf16>, vector<2x16x8xbf16>, vector<2x16x8xf32> -> vector<2x16x8xf32>
    %87 = vector.extract_strided_slice %41 {offsets = [0, 16], sizes = [32, 8], strides = [1, 1]} : vector<32x32xf32> to vector<32x8xf32>
    %88 = vector.shape_cast %87 : vector<32x8xf32> to vector<2x16x8xf32>
    %89 = arith.truncf %88 : vector<2x16x8xf32> to vector<2x16x8xbf16>
    %90 = vector.extract_strided_slice %42 {offsets = [0, 16], sizes = [32, 8], strides = [1, 1]} : vector<32x64xf32> to vector<32x8xf32>
    %91 = vector.shape_cast %90 : vector<32x8xf32> to vector<2x16x8xf32>
    %92 = arith.truncf %91 : vector<2x16x8xf32> to vector<2x16x8xbf16>
    %93 = vector.extract_strided_slice %42 {offsets = [0, 48], sizes = [32, 8], strides = [1, 1]} : vector<32x64xf32> to vector<32x8xf32>
    %94 = vector.shape_cast %93 : vector<32x8xf32> to vector<2x16x8xf32>
    %95 = arith.truncf %94 : vector<2x16x8xf32> to vector<2x16x8xbf16>
    %cst_24 = arith.constant dense<0.000000e+00> : vector<2x16x16xf32>
    %96 = tpu.matmul %89, %92, %cst_24 {dimension_numbers = #tpu.dot_dimension_numbers<[2], [2], [1], [1], [0, 0, 0, 1, 1, 1], [0], [0]>} : vector<2x16x8xbf16>, vector<2x16x8xbf16>, vector<2x16x16xf32> -> vector<2x16x16xf32>
    %cst_25 = arith.constant dense<0xFF800000> : vector<2x16xf32>
    %97 = vector.multi_reduction <maximumf>, %96, %cst_25 [2] : vector<2x16x16xf32> to vector<2x16xf32>
    %98 = vector.shape_cast %97 : vector<2x16xf32> to vector<2x16x1xf32>
    %99 = vector.broadcast %98 : vector<2x16x1xf32> to vector<2x16x16xf32>
    %100 = arith.subf %96, %99 : vector<2x16x16xf32>
    %101 = math.exp %100 : vector<2x16x16xf32>
    %cst_26 = arith.constant dense<0.000000e+00> : vector<2x16xf32>
    %102 = vector.multi_reduction <add>, %101, %cst_26 [2] : vector<2x16x16xf32> to vector<2x16xf32>
    %103 = vector.shape_cast %102 : vector<2x16xf32> to vector<2x16x1xf32>
    %104 = tpu.reciprocal %103 {approx = true} : vector<2x16x1xf32> -> vector<2x16x1xf32>
    %105 = vector.broadcast %104 : vector<2x16x1xf32> to vector<2x16x16xf32>
    %106 = arith.mulf %101, %105 : vector<2x16x16xf32>
    %107 = arith.truncf %106 : vector<2x16x16xf32> to vector<2x16x16xbf16>
    %cst_27 = arith.constant dense<0.000000e+00> : vector<2x16x8xf32>
    %108 = tpu.matmul %107, %95, %cst_27 {dimension_numbers = #tpu.dot_dimension_numbers<[2], [1], [1], [2], [0, 0, 0, 1, 1, 2], [0], [0]>} : vector<2x16x16xbf16>, vector<2x16x8xbf16>, vector<2x16x8xf32> -> vector<2x16x8xf32>
    %109 = vector.extract_strided_slice %41 {offsets = [0, 24], sizes = [32, 8], strides = [1, 1]} : vector<32x32xf32> to vector<32x8xf32>
    %110 = vector.shape_cast %109 : vector<32x8xf32> to vector<2x16x8xf32>
    %111 = arith.truncf %110 : vector<2x16x8xf32> to vector<2x16x8xbf16>
    %112 = vector.extract_strided_slice %42 {offsets = [0, 24], sizes = [32, 8], strides = [1, 1]} : vector<32x64xf32> to vector<32x8xf32>
    %113 = vector.shape_cast %112 : vector<32x8xf32> to vector<2x16x8xf32>
    %114 = arith.truncf %113 : vector<2x16x8xf32> to vector<2x16x8xbf16>
    %115 = vector.extract_strided_slice %42 {offsets = [0, 56], sizes = [32, 8], strides = [1, 1]} : vector<32x64xf32> to vector<32x8xf32>
    %116 = vector.shape_cast %115 : vector<32x8xf32> to vector<2x16x8xf32>
    %117 = arith.truncf %116 : vector<2x16x8xf32> to vector<2x16x8xbf16>
    %cst_28 = arith.constant dense<0.000000e+00> : vector<2x16x16xf32>
    %118 = tpu.matmul %111, %114, %cst_28 {dimension_numbers = #tpu.dot_dimension_numbers<[2], [2], [1], [1], [0, 0, 0, 1, 1, 1], [0], [0]>} : vector<2x16x8xbf16>, vector<2x16x8xbf16>, vector<2x16x16xf32> -> vector<2x16x16xf32>
    %cst_29 = arith.constant dense<0xFF800000> : vector<2x16xf32>
    %119 = vector.multi_reduction <maximumf>, %118, %cst_29 [2] : vector<2x16x16xf32> to vector<2x16xf32>
    %120 = vector.shape_cast %119 : vector<2x16xf32> to vector<2x16x1xf32>
    %121 = vector.broadcast %120 : vector<2x16x1xf32> to vector<2x16x16xf32>
    %122 = arith.subf %118, %121 : vector<2x16x16xf32>
    %123 = math.exp %122 : vector<2x16x16xf32>
    %cst_30 = arith.constant dense<0.000000e+00> : vector<2x16xf32>
    %124 = vector.multi_reduction <add>, %123, %cst_30 [2] : vector<2x16x16xf32> to vector<2x16xf32>
    %125 = vector.shape_cast %124 : vector<2x16xf32> to vector<2x16x1xf32>
    %126 = tpu.reciprocal %125 {approx = true} : vector<2x16x1xf32> -> vector<2x16x1xf32>
    %127 = vector.broadcast %126 : vector<2x16x1xf32> to vector<2x16x16xf32>
    %128 = arith.mulf %123, %127 : vector<2x16x16xf32>
    %129 = arith.truncf %128 : vector<2x16x16xf32> to vector<2x16x16xbf16>
    %cst_31 = arith.constant dense<0.000000e+00> : vector<2x16x8xf32>
    %130 = tpu.matmul %129, %117, %cst_31 {dimension_numbers = #tpu.dot_dimension_numbers<[2], [1], [1], [2], [0, 0, 0, 1, 1, 2], [0], [0]>} : vector<2x16x16xbf16>, vector<2x16x8xbf16>, vector<2x16x8xf32> -> vector<2x16x8xf32>
    %131 = tpu.concatenate %64, %86, %108, %130 in 2 : vector<2x16x8xf32>, vector<2x16x8xf32>, vector<2x16x8xf32>, vector<2x16x8xf32> -> vector<2x16x32xf32>
    %132 = vector.shape_cast %131 : vector<2x16x32xf32> to vector<32x32xf32>
    %133 = arith.addf %3, %132 : vector<32x32xf32>
    %cst_32 = arith.constant dense<0.000000e+00> : vector<32xf32>
    %134 = vector.multi_reduction <add>, %133, %cst_32 [1] : vector<32x32xf32> to vector<32xf32>
    %135 = vector.shape_cast %134 : vector<32xf32> to vector<32x1xf32>
    %cst_33 = arith.constant 3.200000e+01 : f32
    %136 = vector.broadcast %cst_33 : f32 to vector<32x1xf32>
    %137 = arith.divf %135, %136 : vector<32x1xf32>
    %138 = vector.broadcast %137 : vector<32x1xf32> to vector<32x32xf32>
    %139 = arith.subf %133, %138 : vector<32x32xf32>
    %140 = arith.mulf %139, %139 : vector<32x32xf32>
    %cst_34 = arith.constant dense<0.000000e+00> : vector<32xf32>
    %141 = vector.multi_reduction <add>, %140, %cst_34 [1] : vector<32x32xf32> to vector<32xf32>
    %142 = vector.shape_cast %141 : vector<32xf32> to vector<32x1xf32>
    %cst_35 = arith.constant 3.200000e+01 : f32
    %143 = vector.broadcast %cst_35 : f32 to vector<32x1xf32>
    %144 = arith.divf %142, %143 : vector<32x1xf32>
    %145 = vector.broadcast %137 : vector<32x1xf32> to vector<32x32xf32>
    %146 = arith.subf %133, %145 : vector<32x32xf32>
    %cst_36 = arith.constant 9.99999974E-6 : f32
    %147 = vector.broadcast %cst_36 : f32 to vector<32x1xf32>
    %148 = arith.addf %144, %147 : vector<32x1xf32>
    %149 = math.rsqrt %148 : vector<32x1xf32>
    %150 = vector.broadcast %149 : vector<32x1xf32> to vector<32x32xf32>
    %151 = arith.mulf %146, %150 : vector<32x32xf32>
    %152 = vector.broadcast %10 : vector<1x32xf32> to vector<32x32xf32>
    %153 = arith.mulf %151, %152 : vector<32x32xf32>
    %154 = vector.broadcast %11 : vector<1x32xf32> to vector<32x32xf32>
    %155 = arith.addf %153, %154 : vector<32x32xf32>
    %156 = arith.truncf %155 : vector<32x32xf32> to vector<32x32xbf16>
    %c0_37 = arith.constant 0 : index
    %c0_38 = arith.constant 0 : index
    %c0_39 = arith.constant 0 : index
    %157 = vector.load %arg6[%c0_37, %c0_38, %c0_39] : memref<1x32x96xbf16, #tpu.memory_space<vmem>>, vector<1x32x96xbf16>
    %158 = vector.shape_cast %157 : vector<1x32x96xbf16> to vector<32x96xbf16>
    %159 = vector.extract_strided_slice %158 {offsets = [0, 0], sizes = [32, 32], strides = [1, 1]} : vector<32x96xbf16> to vector<32x32xbf16>
    %cst_40 = arith.constant dense<0.000000e+00> : vector<32x32xf32>
    %160 = tpu.matmul %156, %159, %cst_40 {dimension_numbers = #tpu.dot_dimension_numbers<[1], [0], [0], [1], [0, 0, 1, 1], [], []>} : vector<32x32xbf16>, vector<32x32xbf16>, vector<32x32xf32> -> vector<32x32xf32>
    %161 = arith.truncf %5 : vector<4x32xf32> to vector<4x32xbf16>
    %162 = vector.extract_strided_slice %158 {offsets = [0, 32], sizes = [32, 64], strides = [1, 1]} : vector<32x96xbf16> to vector<32x64xbf16>
    %cst_41 = arith.constant dense<0.000000e+00> : vector<4x64xf32>
    %163 = tpu.matmul %161, %162, %cst_41 {dimension_numbers = #tpu.dot_dimension_numbers<[1], [0], [0], [1], [0, 0, 1, 1], [], []>} : vector<4x32xbf16>, vector<32x64xbf16>, vector<4x64xf32> -> vector<4x64xf32>
    %164 = vector.extract_strided_slice %160 {offsets = [0, 0], sizes = [32, 8], strides = [1, 1]} : vector<32x32xf32> to vector<32x8xf32>
    %165 = vector.shape_cast %164 : vector<32x8xf32> to vector<2x16x8xf32>
    %166 = arith.truncf %165 : vector<2x16x8xf32> to vector<2x16x8xbf16>
    %167 = vector.extract_strided_slice %163 {offsets = [0, 0], sizes = [4, 8], strides = [1, 1]} : vector<4x64xf32> to vector<4x8xf32>
    %168 = vector.shape_cast %167 : vector<4x8xf32> to vector<2x2x8xf32>
    %169 = arith.truncf %168 : vector<2x2x8xf32> to vector<2x2x8xbf16>
    %170 = vector.extract_strided_slice %163 {offsets = [0, 32], sizes = [4, 8], strides = [1, 1]} : vector<4x64xf32> to vector<4x8xf32>
    %171 = vector.shape_cast %170 : vector<4x8xf32> to vector<2x2x8xf32>
    %172 = arith.truncf %171 : vector<2x2x8xf32> to vector<2x2x8xbf16>
    %cst_42 = arith.constant dense<0.000000e+00> : vector<2x16x2xf32>
    %173 = tpu.matmul %166, %169, %cst_42 {dimension_numbers = #tpu.dot_dimension_numbers<[2], [2], [1], [1], [0, 0, 0, 1, 1, 1], [0], [0]>} : vector<2x16x8xbf16>, vector<2x2x8xbf16>, vector<2x16x2xf32> -> vector<2x16x2xf32>
    %cst_43 = arith.constant dense<0xFF800000> : vector<2x16xf32>
    %174 = vector.multi_reduction <maximumf>, %173, %cst_43 [2] : vector<2x16x2xf32> to vector<2x16xf32>
    %175 = vector.shape_cast %174 : vector<2x16xf32> to vector<2x16x1xf32>
    %176 = vector.broadcast %175 : vector<2x16x1xf32> to vector<2x16x2xf32>
    %177 = arith.subf %173, %176 : vector<2x16x2xf32>
    %178 = math.exp %177 : vector<2x16x2xf32>
    %cst_44 = arith.constant dense<0.000000e+00> : vector<2x16xf32>
    %179 = vector.multi_reduction <add>, %178, %cst_44 [2] : vector<2x16x2xf32> to vector<2x16xf32>
    %180 = vector.shape_cast %179 : vector<2x16xf32> to vector<2x16x1xf32>
    %181 = tpu.reciprocal %180 {approx = true} : vector<2x16x1xf32> -> vector<2x16x1xf32>
    %182 = vector.broadcast %181 : vector<2x16x1xf32> to vector<2x16x2xf32>
    %183 = arith.mulf %178, %182 : vector<2x16x2xf32>
    %184 = arith.truncf %183 : vector<2x16x2xf32> to vector<2x16x2xbf16>
    %cst_45 = arith.constant dense<0.000000e+00> : vector<2x16x8xf32>
    %185 = tpu.matmul %184, %172, %cst_45 {dimension_numbers = #tpu.dot_dimension_numbers<[2], [1], [1], [2], [0, 0, 0, 1, 1, 2], [0], [0]>} : vector<2x16x2xbf16>, vector<2x2x8xbf16>, vector<2x16x8xf32> -> vector<2x16x8xf32>
    %186 = vector.extract_strided_slice %160 {offsets = [0, 8], sizes = [32, 8], strides = [1, 1]} : vector<32x32xf32> to vector<32x8xf32>
    %187 = vector.shape_cast %186 : vector<32x8xf32> to vector<2x16x8xf32>
    %188 = arith.truncf %187 : vector<2x16x8xf32> to vector<2x16x8xbf16>
    %189 = vector.extract_strided_slice %163 {offsets = [0, 8], sizes = [4, 8], strides = [1, 1]} : vector<4x64xf32> to vector<4x8xf32>
    %190 = vector.shape_cast %189 : vector<4x8xf32> to vector<2x2x8xf32>
    %191 = arith.truncf %190 : vector<2x2x8xf32> to vector<2x2x8xbf16>
    %192 = vector.extract_strided_slice %163 {offsets = [0, 40], sizes = [4, 8], strides = [1, 1]} : vector<4x64xf32> to vector<4x8xf32>
    %193 = vector.shape_cast %192 : vector<4x8xf32> to vector<2x2x8xf32>
    %194 = arith.truncf %193 : vector<2x2x8xf32> to vector<2x2x8xbf16>
    %cst_46 = arith.constant dense<0.000000e+00> : vector<2x16x2xf32>
    %195 = tpu.matmul %188, %191, %cst_46 {dimension_numbers = #tpu.dot_dimension_numbers<[2], [2], [1], [1], [0, 0, 0, 1, 1, 1], [0], [0]>} : vector<2x16x8xbf16>, vector<2x2x8xbf16>, vector<2x16x2xf32> -> vector<2x16x2xf32>
    %cst_47 = arith.constant dense<0xFF800000> : vector<2x16xf32>
    %196 = vector.multi_reduction <maximumf>, %195, %cst_47 [2] : vector<2x16x2xf32> to vector<2x16xf32>
    %197 = vector.shape_cast %196 : vector<2x16xf32> to vector<2x16x1xf32>
    %198 = vector.broadcast %197 : vector<2x16x1xf32> to vector<2x16x2xf32>
    %199 = arith.subf %195, %198 : vector<2x16x2xf32>
    %200 = math.exp %199 : vector<2x16x2xf32>
    %cst_48 = arith.constant dense<0.000000e+00> : vector<2x16xf32>
    %201 = vector.multi_reduction <add>, %200, %cst_48 [2] : vector<2x16x2xf32> to vector<2x16xf32>
    %202 = vector.shape_cast %201 : vector<2x16xf32> to vector<2x16x1xf32>
    %203 = tpu.reciprocal %202 {approx = true} : vector<2x16x1xf32> -> vector<2x16x1xf32>
    %204 = vector.broadcast %203 : vector<2x16x1xf32> to vector<2x16x2xf32>
    %205 = arith.mulf %200, %204 : vector<2x16x2xf32>
    %206 = arith.truncf %205 : vector<2x16x2xf32> to vector<2x16x2xbf16>
    %cst_49 = arith.constant dense<0.000000e+00> : vector<2x16x8xf32>
    %207 = tpu.matmul %206, %194, %cst_49 {dimension_numbers = #tpu.dot_dimension_numbers<[2], [1], [1], [2], [0, 0, 0, 1, 1, 2], [0], [0]>} : vector<2x16x2xbf16>, vector<2x2x8xbf16>, vector<2x16x8xf32> -> vector<2x16x8xf32>
    %208 = vector.extract_strided_slice %160 {offsets = [0, 16], sizes = [32, 8], strides = [1, 1]} : vector<32x32xf32> to vector<32x8xf32>
    %209 = vector.shape_cast %208 : vector<32x8xf32> to vector<2x16x8xf32>
    %210 = arith.truncf %209 : vector<2x16x8xf32> to vector<2x16x8xbf16>
    %211 = vector.extract_strided_slice %163 {offsets = [0, 16], sizes = [4, 8], strides = [1, 1]} : vector<4x64xf32> to vector<4x8xf32>
    %212 = vector.shape_cast %211 : vector<4x8xf32> to vector<2x2x8xf32>
    %213 = arith.truncf %212 : vector<2x2x8xf32> to vector<2x2x8xbf16>
    %214 = vector.extract_strided_slice %163 {offsets = [0, 48], sizes = [4, 8], strides = [1, 1]} : vector<4x64xf32> to vector<4x8xf32>
    %215 = vector.shape_cast %214 : vector<4x8xf32> to vector<2x2x8xf32>
    %216 = arith.truncf %215 : vector<2x2x8xf32> to vector<2x2x8xbf16>
    %cst_50 = arith.constant dense<0.000000e+00> : vector<2x16x2xf32>
    %217 = tpu.matmul %210, %213, %cst_50 {dimension_numbers = #tpu.dot_dimension_numbers<[2], [2], [1], [1], [0, 0, 0, 1, 1, 1], [0], [0]>} : vector<2x16x8xbf16>, vector<2x2x8xbf16>, vector<2x16x2xf32> -> vector<2x16x2xf32>
    %cst_51 = arith.constant dense<0xFF800000> : vector<2x16xf32>
    %218 = vector.multi_reduction <maximumf>, %217, %cst_51 [2] : vector<2x16x2xf32> to vector<2x16xf32>
    %219 = vector.shape_cast %218 : vector<2x16xf32> to vector<2x16x1xf32>
    %220 = vector.broadcast %219 : vector<2x16x1xf32> to vector<2x16x2xf32>
    %221 = arith.subf %217, %220 : vector<2x16x2xf32>
    %222 = math.exp %221 : vector<2x16x2xf32>
    %cst_52 = arith.constant dense<0.000000e+00> : vector<2x16xf32>
    %223 = vector.multi_reduction <add>, %222, %cst_52 [2] : vector<2x16x2xf32> to vector<2x16xf32>
    %224 = vector.shape_cast %223 : vector<2x16xf32> to vector<2x16x1xf32>
    %225 = tpu.reciprocal %224 {approx = true} : vector<2x16x1xf32> -> vector<2x16x1xf32>
    %226 = vector.broadcast %225 : vector<2x16x1xf32> to vector<2x16x2xf32>
    %227 = arith.mulf %222, %226 : vector<2x16x2xf32>
    %228 = arith.truncf %227 : vector<2x16x2xf32> to vector<2x16x2xbf16>
    %cst_53 = arith.constant dense<0.000000e+00> : vector<2x16x8xf32>
    %229 = tpu.matmul %228, %216, %cst_53 {dimension_numbers = #tpu.dot_dimension_numbers<[2], [1], [1], [2], [0, 0, 0, 1, 1, 2], [0], [0]>} : vector<2x16x2xbf16>, vector<2x2x8xbf16>, vector<2x16x8xf32> -> vector<2x16x8xf32>
    %230 = vector.extract_strided_slice %160 {offsets = [0, 24], sizes = [32, 8], strides = [1, 1]} : vector<32x32xf32> to vector<32x8xf32>
    %231 = vector.shape_cast %230 : vector<32x8xf32> to vector<2x16x8xf32>
    %232 = arith.truncf %231 : vector<2x16x8xf32> to vector<2x16x8xbf16>
    %233 = vector.extract_strided_slice %163 {offsets = [0, 24], sizes = [4, 8], strides = [1, 1]} : vector<4x64xf32> to vector<4x8xf32>
    %234 = vector.shape_cast %233 : vector<4x8xf32> to vector<2x2x8xf32>
    %235 = arith.truncf %234 : vector<2x2x8xf32> to vector<2x2x8xbf16>
    %236 = vector.extract_strided_slice %163 {offsets = [0, 56], sizes = [4, 8], strides = [1, 1]} : vector<4x64xf32> to vector<4x8xf32>
    %237 = vector.shape_cast %236 : vector<4x8xf32> to vector<2x2x8xf32>
    %238 = arith.truncf %237 : vector<2x2x8xf32> to vector<2x2x8xbf16>
    %cst_54 = arith.constant dense<0.000000e+00> : vector<2x16x2xf32>
    %239 = tpu.matmul %232, %235, %cst_54 {dimension_numbers = #tpu.dot_dimension_numbers<[2], [2], [1], [1], [0, 0, 0, 1, 1, 1], [0], [0]>} : vector<2x16x8xbf16>, vector<2x2x8xbf16>, vector<2x16x2xf32> -> vector<2x16x2xf32>
    %cst_55 = arith.constant dense<0xFF800000> : vector<2x16xf32>
    %240 = vector.multi_reduction <maximumf>, %239, %cst_55 [2] : vector<2x16x2xf32> to vector<2x16xf32>
    %241 = vector.shape_cast %240 : vector<2x16xf32> to vector<2x16x1xf32>
    %242 = vector.broadcast %241 : vector<2x16x1xf32> to vector<2x16x2xf32>
    %243 = arith.subf %239, %242 : vector<2x16x2xf32>
    %244 = math.exp %243 : vector<2x16x2xf32>
    %cst_56 = arith.constant dense<0.000000e+00> : vector<2x16xf32>
    %245 = vector.multi_reduction <add>, %244, %cst_56 [2] : vector<2x16x2xf32> to vector<2x16xf32>
    %246 = vector.shape_cast %245 : vector<2x16xf32> to vector<2x16x1xf32>
    %247 = tpu.reciprocal %246 {approx = true} : vector<2x16x1xf32> -> vector<2x16x1xf32>
    %248 = vector.broadcast %247 : vector<2x16x1xf32> to vector<2x16x2xf32>
    %249 = arith.mulf %244, %248 : vector<2x16x2xf32>
    %250 = arith.truncf %249 : vector<2x16x2xf32> to vector<2x16x2xbf16>
    %cst_57 = arith.constant dense<0.000000e+00> : vector<2x16x8xf32>
    %251 = tpu.matmul %250, %238, %cst_57 {dimension_numbers = #tpu.dot_dimension_numbers<[2], [1], [1], [2], [0, 0, 0, 1, 1, 2], [0], [0]>} : vector<2x16x2xbf16>, vector<2x2x8xbf16>, vector<2x16x8xf32> -> vector<2x16x8xf32>
    %252 = tpu.concatenate %185, %207, %229, %251 in 2 : vector<2x16x8xf32>, vector<2x16x8xf32>, vector<2x16x8xf32>, vector<2x16x8xf32> -> vector<2x16x32xf32>
    %253 = vector.shape_cast %252 : vector<2x16x32xf32> to vector<32x32xf32>
    %254 = arith.addf %133, %253 : vector<32x32xf32>
    %cst_58 = arith.constant dense<0.000000e+00> : vector<32xf32>
    %255 = vector.multi_reduction <add>, %254, %cst_58 [1] : vector<32x32xf32> to vector<32xf32>
    %256 = vector.shape_cast %255 : vector<32xf32> to vector<32x1xf32>
    %cst_59 = arith.constant 3.200000e+01 : f32
    %257 = vector.broadcast %cst_59 : f32 to vector<32x1xf32>
    %258 = arith.divf %256, %257 : vector<32x1xf32>
    %259 = vector.broadcast %258 : vector<32x1xf32> to vector<32x32xf32>
    %260 = arith.subf %254, %259 : vector<32x32xf32>
    %261 = arith.mulf %260, %260 : vector<32x32xf32>
    %cst_60 = arith.constant dense<0.000000e+00> : vector<32xf32>
    %262 = vector.multi_reduction <add>, %261, %cst_60 [1] : vector<32x32xf32> to vector<32xf32>
    %263 = vector.shape_cast %262 : vector<32xf32> to vector<32x1xf32>
    %cst_61 = arith.constant 3.200000e+01 : f32
    %264 = vector.broadcast %cst_61 : f32 to vector<32x1xf32>
    %265 = arith.divf %263, %264 : vector<32x1xf32>
    %266 = vector.broadcast %258 : vector<32x1xf32> to vector<32x32xf32>
    %267 = arith.subf %254, %266 : vector<32x32xf32>
    %cst_62 = arith.constant 9.99999974E-6 : f32
    %268 = vector.broadcast %cst_62 : f32 to vector<32x1xf32>
    %269 = arith.addf %265, %268 : vector<32x1xf32>
    %270 = math.rsqrt %269 : vector<32x1xf32>
    %271 = vector.broadcast %270 : vector<32x1xf32> to vector<32x32xf32>
    %272 = arith.mulf %267, %271 : vector<32x32xf32>
    %273 = vector.broadcast %12 : vector<1x32xf32> to vector<32x32xf32>
    %274 = arith.mulf %272, %273 : vector<32x32xf32>
    %275 = vector.broadcast %13 : vector<1x32xf32> to vector<32x32xf32>
    %276 = arith.addf %274, %275 : vector<32x32xf32>
    %277 = arith.truncf %276 : vector<32x32xf32> to vector<32x32xbf16>
    %c0_63 = arith.constant 0 : index
    %c0_64 = arith.constant 0 : index
    %c0_65 = arith.constant 0 : index
    %278 = vector.load %arg7[%c0_63, %c0_64, %c0_65] : memref<1x32x128xbf16, #tpu.memory_space<vmem>>, vector<1x32x128xbf16>
    %279 = vector.shape_cast %278 : vector<1x32x128xbf16> to vector<32x128xbf16>
    %cst_66 = arith.constant dense<0.000000e+00> : vector<32x128xf32>
    %280 = tpu.matmul %277, %279, %cst_66 {dimension_numbers = #tpu.dot_dimension_numbers<[1], [0], [0], [1], [0, 0, 1, 1], [], []>} : vector<32x32xbf16>, vector<32x128xbf16>, vector<32x128xf32> -> vector<32x128xf32>
    %c0_67 = arith.constant 0 : index
    %c0_68 = arith.constant 0 : index
    %c0_69 = arith.constant 0 : index
    %281 = vector.load %arg8[%c0_67, %c0_68, %c0_69] : memref<1x1x128xf32, #tpu.memory_space<vmem>>, vector<1x1x128xf32>
    %282 = vector.shape_cast %281 : vector<1x1x128xf32> to vector<1x128xf32>
    %283 = vector.broadcast %282 : vector<1x128xf32> to vector<32x128xf32>
    %284 = arith.addf %280, %283 : vector<32x128xf32>
    %cst_70 = arith.constant 5.000000e-01 : f32
    %285 = vector.broadcast %cst_70 : f32 to vector<32x128xf32>
    %286 = arith.mulf %285, %284 : vector<32x128xf32>
    %cst_71 = arith.constant 4.471500e-02 : f32
    %287 = vector.broadcast %cst_71 : f32 to vector<32x128xf32>
    %288 = arith.mulf %287, %284 : vector<32x128xf32>
    %289 = arith.mulf %288, %284 : vector<32x128xf32>
    %290 = arith.mulf %289, %284 : vector<32x128xf32>
    %291 = arith.addf %284, %290 : vector<32x128xf32>
    %cst_72 = arith.constant 0.797884583 : f32
    %292 = vector.broadcast %cst_72 : f32 to vector<32x128xf32>
    %293 = arith.mulf %292, %291 : vector<32x128xf32>
    %294 = math.tanh %293 : vector<32x128xf32>
    %cst_73 = arith.constant 1.000000e+00 : f32
    %295 = vector.broadcast %cst_73 : f32 to vector<32x128xf32>
    %296 = arith.addf %295, %294 : vector<32x128xf32>
    %297 = arith.mulf %286, %296 : vector<32x128xf32>
    %298 = arith.truncf %297 : vector<32x128xf32> to vector<32x128xbf16>
    %c0_74 = arith.constant 0 : index
    %c0_75 = arith.constant 0 : index
    %c0_76 = arith.constant 0 : index
    %299 = vector.load %arg9[%c0_74, %c0_75, %c0_76] : memref<1x128x32xbf16, #tpu.memory_space<vmem>>, vector<1x128x32xbf16>
    %300 = vector.shape_cast %299 : vector<1x128x32xbf16> to vector<128x32xbf16>
    %cst_77 = arith.constant dense<0.000000e+00> : vector<32x32xf32>
    %301 = tpu.matmul %298, %300, %cst_77 {dimension_numbers = #tpu.dot_dimension_numbers<[1], [0], [0], [1], [0, 0, 1, 1], [], []>} : vector<32x128xbf16>, vector<128x32xbf16>, vector<32x32xf32> -> vector<32x32xf32>
    %302 = arith.addf %254, %301 : vector<32x32xf32>
    %303 = vector.broadcast %14 : vector<1x32xf32> to vector<32x32xf32>
    %304 = arith.addf %302, %303 : vector<32x32xf32>
    %c0_78 = arith.constant 0 : index
    %c0_79 = arith.constant 0 : index
    %305 = vector.load %arg13[%c0_78, %c0_79] : memref<32x32xf32, #tpu.memory_space<vmem>>, vector<32x32xf32>
    tpu.vector_store %arg13[%c0_78, %c0_79], %304 {strides = array<i32>} : memref<32x32xf32, #tpu.memory_space<vmem>>, vector<32x32xf32>,
    %c1_i32 = arith.constant 1 : i32
    %306 = arith.cmpi eq, %arg1, %c1_i32 : i32
    %307 = arith.extui %306 : i1 to i32
    %c0_i32_80 = arith.constant 0 : i32
    %308 = arith.cmpi ne, %307, %c0_i32_80 : i32
    scf.if %308 {
      %c0_81 = arith.constant 0 : index
      %c0_82 = arith.constant 0 : index
      %309 = vector.load %arg10[%c0_81, %c0_82] : memref<4x32xbf16, #tpu.memory_space<vmem>>, vector<4x32xbf16>
      %310 = arith.truncf %304 : vector<32x32xf32> to vector<32x32xbf16>
      %cst_83 = arith.constant dense<0.000000e+00> : vector<4x32xf32>
      %311 = tpu.matmul %309, %310, %cst_83 {dimension_numbers = #tpu.dot_dimension_numbers<[1], [1], [0], [0], [0, 0, 1, 0], [], []>} : vector<4x32xbf16>, vector<32x32xbf16>, vector<4x32xf32> -> vector<4x32xf32>
      %c0_84 = arith.constant 0 : index
      %c0_85 = arith.constant 0 : index
      %312 = vector.load %arg11[%c0_84, %c0_85] : memref<4x1xf32, #tpu.memory_space<vmem>>, vector<4x1xf32>
      %313 = vector.broadcast %312 : vector<4x1xf32> to vector<4x32xf32>
      %314 = arith.addf %311, %313 : vector<4x32xf32>
      %c0_86 = arith.constant 0 : index
      %c0_87 = arith.constant 0 : index
      %c0_88 = arith.constant 0 : index
      %315 = vector.load %arg12[%c0_86, %c0_87, %c0_88] : memref<1x4x32xf32, #tpu.memory_space<vmem>>, vector<1x4x32xf32>
      %316 = vector.shape_cast %315 : vector<1x4x32xf32> to vector<4x32xf32>
      %317 = vector.shape_cast %314 : vector<4x32xf32> to vector<1x4x32xf32>
      tpu.vector_store %arg12[%c0_86, %c0_87, %c0_88], %317 {strides = array<i32>} : memref<1x4x32xf32, #tpu.memory_space<vmem>>, vector<1x4x32xf32>,
    } else {
    }
    return
  }
  func.func @transform_0(%arg0: i32, %arg1: i32) -> (i32, i32, i32) {
    %c0_i32 = arith.constant 0 : i32
    %c0_i32_0 = arith.constant 0 : i32
    %c0_i32_1 = arith.constant 0 : i32
    return %arg0, %c0_i32, %c0_i32_0 : i32, i32, i32
  }
  func.func @transform_1(%arg0: i32, %arg1: i32) -> (i32, i32, i32) {
    %c0_i32 = arith.constant 0 : i32
    %c0_i32_0 = arith.constant 0 : i32
    %c0_i32_1 = arith.constant 0 : i32
    return %arg0, %c0_i32, %c0_i32_0 : i32, i32, i32
  }
  func.func @transform_2(%arg0: i32, %arg1: i32) -> (i32, i32, i32) {
    %c0_i32 = arith.constant 0 : i32
    %c0_i32_0 = arith.constant 0 : i32
    %c0_i32_1 = arith.constant 0 : i32
    return %arg1, %c0_i32, %c0_i32_0 : i32, i32, i32
  }
  func.func @transform_3(%arg0: i32, %arg1: i32) -> (i32, i32, i32) {
    %c0_i32 = arith.constant 0 : i32
    %c0_i32_0 = arith.constant 0 : i32
    %c0_i32_1 = arith.constant 0 : i32
    return %arg1, %c0_i32, %c0_i32_0 : i32, i32, i32
  }
  func.func @transform_4(%arg0: i32, %arg1: i32) -> (i32, i32, i32) {
    %c0_i32 = arith.constant 0 : i32
    %c0_i32_0 = arith.constant 0 : i32
    %c0_i32_1 = arith.constant 0 : i32
    return %arg1, %c0_i32, %c0_i32_0 : i32, i32, i32
  }
  func.func @transform_5(%arg0: i32, %arg1: i32) -> (i32, i32, i32) {
    %c0_i32 = arith.constant 0 : i32
    %c0_i32_0 = arith.constant 0 : i32
    %c0_i32_1 = arith.constant 0 : i32
    return %arg1, %c0_i32, %c0_i32_0 : i32, i32, i32
  }
  func.func @transform_6(%arg0: i32, %arg1: i32) -> (i32, i32, i32) {
    %c0_i32 = arith.constant 0 : i32
    %c0_i32_0 = arith.constant 0 : i32
    %c0_i32_1 = arith.constant 0 : i32
    return %arg1, %c0_i32, %c0_i32_0 : i32, i32, i32
  }
  func.func @transform_7(%arg0: i32, %arg1: i32) -> (i32, i32, i32) {
    %c0_i32 = arith.constant 0 : i32
    %c0_i32_0 = arith.constant 0 : i32
    %c0_i32_1 = arith.constant 0 : i32
    return %arg1, %c0_i32, %c0_i32_0 : i32, i32, i32
  }
  func.func @transform_8(%arg0: i32, %arg1: i32) -> (i32, i32) {
    %c0_i32 = arith.constant 0 : i32
    %c0_i32_0 = arith.constant 0 : i32
    %c0_i32_1 = arith.constant 0 : i32
    return %c0_i32, %c0_i32_0 : i32, i32
  }
  func.func @transform_9(%arg0: i32, %arg1: i32) -> (i32, i32) {
    %c0_i32 = arith.constant 0 : i32
    %c0_i32_0 = arith.constant 0 : i32
    %c0_i32_1 = arith.constant 0 : i32
    return %c0_i32, %c0_i32_0 : i32, i32
  }
  func.func @transform_10(%arg0: i32, %arg1: i32) -> (i32, i32, i32) {
    %c0_i32 = arith.constant 0 : i32
    %c0_i32_0 = arith.constant 0 : i32
    %c0_i32_1 = arith.constant 0 : i32
    return %arg0, %c0_i32, %c0_i32_0 : i32, i32, i32
  }
}

</mosaic_0001>

<bundles_post_ra>
// kernel: denoiser_forward.1
= control target key start
LH: loop header
LB: loop body
LE: loop exit
PB: predicated region body
PF: predicated region fallthrough
CT: control target
= control target key end

     0   :  { %s4242_s13 = smov 0   ;;  %s4244_s14 = smov 0   ;;  %s4863_s0 = inlined_call_operand.vmem [shape: f32[2,16,32], index: 0, kind: input, shape index: {}]   ;;  %s4864_s1 = inlined_call_operand.vmem [shape: f32[2,2,32], index: 1, kind: input, shape index: {}]   ;;  %s4865_s2 = inlined_call_operand.vmem [shape: f32[2,7,32], index: 2, kind: input, shape index: {}]   ;;  %s4866_s3 = inlined_call_operand.vmem [shape: bf16[2,32,96], index: 3, kind: input, shape index: {}]   ;;  %s4867_s4 = inlined_call_operand.vmem [shape: bf16[2,32,96], index: 4, kind: input, shape index: {}]   ;;  %s4868_s5 = inlined_call_operand.vmem [shape: bf16[2,32,128], index: 5, kind: input, shape index: {}]   ;;  %s4869_s6 = inlined_call_operand.vmem [shape: f32[2,1,128], index: 6, kind: input, shape index: {}]   ;;  %s4870_s7 = inlined_call_operand.vmem [shape: bf16[2,128,32], index: 7, kind: input, shape index: {}]   ;;  %s4871_s8 = inlined_call_operand.vmem [shape: bf16[4,32], index: 8, kind: input, shape index: {}]   ;;  %s4872_s9 = inlined_call_operand.vmem [shape: f32[4,1], index: 9, kind: input, shape index: {}]   ;;  %s4873_s10 = inlined_call_operand.vmem [shape: f32[1,4,32], index: 10, kind: output, shape index: {}]  }
   0x1   :  { %4874 = sst [smem:[#allocation4_spill]] %s4865_s2  ;;  %s4246_s15 = smov 0  }
   0x2 LB: > { %s29_s16 = sadd.s32 1, %s4161_s14  ;;  %p3500_p0 = scmp.ge.s32.totalorder %s4165_s15, 1  ;;  %s4165_s15 = sphi %s4246_s15, %s20_s15   ;;  %s4161_s14 = sphi %s4244_s14, %s4880_s14   ;;  %s4157_s13 = sphi %s4242_s13, %s4879_s13  }
   0x3   : > { %p30_p1 = scmp.ge.s32.totalorder %s29_s16, 2  ;;  %p394_p2 = scmp.lt.s32.totalorder %s4165_s15, 3 }
   0x5   : > { %s4882_s16 = smov (%p30_p1, %s29_s16), 0  ;;  %p395_p3 = pnand %p3500_p0, %p394_p2 }
   0x6   : > { %4875 = sst [smem:[#allocation3_spill]] %s4882_s16  ;;  %p477_p4 = scmp.lt.s32.totalorder (!%p395_p3), %s4157_s13, 1 }
   0x7   : > { %398 = sbr.rel (%p395_p3) target bundleno = 7340 (0x1cac), region = 60  ;;  %s4876_s2 = sld [smem:[#allocation4_spill]] (!%p395_p3) }
   0x8   : > { %p3510_p5 = scmp.ne.s32.totalorder (!%p395_p3), %s4157_s13, 0 }
   0xe   : > { %s4264_s17 = scalar_select %p477_p4, %s4157_s13, 1 }
   0xf   : > { %512 = sbr.rel (%p3510_p5) target bundleno = 22 (0x16), region = 64  ;;  %v513_v0 = vld [vmem:[%s4863_s0] sm:$0xff] (!%p3510_p5)  ;;  %vm517_vm0 = vcmask (!%p3510_p5), 261120   ;;  %v514_v1 = vld [vmem:[%s4863_s0 + $0x8] sm:$0xff] (!%p3510_p5)  ;;  %v515_v2 = vld [vmem:[%s4863_s0 + $0x10] sm:$0xff] (!%p3510_p5) }
  0x10   : > { %s3501_s18 = sshll.u32 %s4264_s17, 3  ;;  %s3570_s19 = sshll.u32 %s4264_s17, 4  ;;  %518 = vst.msk [vmem:[#allocation2] sm:$0xff] (!%p3510_p5), %vm517_vm0, %v513_v0  ;;  %519 = vst.msk [vmem:[#allocation2 + $0x8] sm:$0xff] (!%p3510_p5), %vm517_vm0, %v514_v1  ;;  %v516_v3 = vld [vmem:[%s4863_s0 + $0x18] sm:$0xff] (!%p3510_p5) }
  0x11   : > { %s4271_s22 = scalar_lea.vmem %s4876_s2, %s3501_s18  ;;  %s4276_s25 = scalar_lea.vmem %s4866_s3, %s3570_s19  ;;  %520 = vst.msk [vmem:[#allocation2 + $0x10] sm:$0xff] (!%p3510_p5), %vm517_vm0, %v515_v2  ;;  %521 = vst.msk [vmem:[#allocation2 + $0x18] sm:$0xff] (!%p3510_p5), %vm517_vm0, %v516_v3 }
  0x12   : > { %s4281_s28 = scalar_lea.vmem %s4867_s4, %s3570_s19  ;;  %s4286_s11 = scalar_lea.vmem %s4868_s5, %s3570_s19 }
  0x13   : > { %s3573_s20 = sshll.u32 %s4264_s17, 6 }
  0x14   : > { %s4296_s23 = scalar_lea.vmem %s4870_s7, %s3573_s20 }
  0x16 PF: > { %vm529_vm1 = vcmask 261120   ;;  %v3962_v32 = vld [vmem:[%s4276_s25] sm:$0xff]   ;;  %v3963_v33 = vld [vmem:[%s4276_s25 + $0x8] sm:$0xff]   ;;  %v583_v39 = vlaneseq  ;;  %vm4168_vm2 = vmmov 0   ;;  %s4169_s25 = smov 96   ;;  %vm677_vm3 = vcmask 64512   ;;  %s4877_s18 = scalar_lea.vmem %s4869_s6, %s4264_s17 }
  0x17   : > { %v522_v4 = vld [vmem:[#allocation2] sm:$0xff]  ;;  %v523_v6 = vld [vmem:[#allocation2 + $0x8] sm:$0xff]  ;;  %3666 = vmatprep.subr.bf16.mxu1 %v3962_v32  ;;  %vm775_vm4 = vcmask 130048   ;;  %s4170_s12 = smov 64   ;;  %s4171_s20 = smov 88   ;;  %vm1698_vm5 = vcmask 195584  }
  0x18   : > { %v524_v5 = vld [vmem:[#allocation2 + $0x10] sm:$0xff]  ;;  %v530_v7 = vsel %vm529_vm1, %v522_v4, 0.0  ;;  %v525_v9 = vld [vmem:[#allocation2 + $0x18] sm:$0xff]  ;;  %v533_v10 = vsel %vm529_vm1, %v523_v6, 0.0  ;;  %3667 = vmatpush3.bf16.msra.mxu1 %v3962_v32  ;;  %v4321_v45 = vshrl.u32 %v583_v39, 7  ;;  %s4172_s21 = smov 120  }
  0x19   : > { %v536_v8 = vsel %vm529_vm1, %v524_v5, 0.0  ;;  %531 = vadd.xlane.f32.xlu0 %v530_v7  ;;  %v539_v11 = vsel %vm529_vm1, %v525_v9, 0.0  ;;  %3668 = vmatprep.subr.bf16.mxu1 %v3963_v33  ;;  %v528_v49 = vld [vmem:[%s4271_s22] sm:$0x7f]  ;;  %v4167_v7 = vmov 0.0   ;;  %s4173_s24 = smov 56  }
  0x1a   : > { %537 = vadd.xlane.f32.xlu1 %v536_v8  ;;  %v585_v48 = vsub.s32 0, %v4321_v45  ;;  %v593_v53 = vsub.s32 1, %v4321_v45  ;;  %3692 = vmatprep.subr.bf16.mxu0 %v4167_v7  ;;  %s4174_s26 = smov 80   ;;  %s4175_s19 = smov 112   ;;  %vm2018_vm6 = vcmask 15360   ;;  %vm2071_vm7 = vcmask 1040384  }
  0x1b   : > { %3694 = vmatprep.mubr.msk.bf16.mxu0 %vm4168_vm2, %v4167_v7  ;;  %s4176_s27 = smov 48   ;;  %s4177_s16 = smov 72  }
  0x1c   : > { %3669 = vmatpush3.bf16.msra.mxu1 %v3963_v33  ;;  %v586_v52 = vrot.slane %v528_v49, %v585_v48  ;;  %v594_v58 = vrot.slane %v528_v49, %v593_v53  ;;  %s4178_s29 = smov 104   ;;  %s4179_s2 = smov 40  }
  0x1d   : > { %534 = vadd.xlane.f32.xlu0 %v533_v10  ;;  %3674 = vmatprep.subr.bf16.mxu1 %v4167_v7  ;;  %s4180_s30 = smov 8   ;;  %p3565_p6 = scmp.ne.s32.totalorder %s4157_s13, 1 }
  0x1e   : > { %540 = vadd.xlane.f32.xlu1 %v539_v11  ;;  %vm4185_vm8 = vmmov (!%p3565_p6), 0   ;;  %vm3347_vm9 = vcmask (!%p3565_p6), 257024  }
  0xa6   : > { %v532_v12 = vpop.xlane.xlu0 %531 }
  0xa7   : > { %v538_v13 = vpop.xlane.xlu1 %537  ;;  %v543_v14 = vmul.f32 0.03125, %v532_v12 }
  0xa8   : > { %v545_v15 = vmul.f32 0.03125, %v538_v13 }
  0xa9   : > { %v547_v16 = vsub.f32 %v522_v4, %v543_v14 }
  0xaa   : > { %v549_v17 = vsub.f32 %v524_v5, %v545_v15  ;;  %v535_v18 = vpop.xlane.xlu0 %534 }
  0xab   : > { %v541_v19 = vpop.xlane.xlu1 %540  ;;  %v544_v20 = vmul.f32 0.03125, %v535_v18  ;;  %v551_v22 = vmul.f32 %v547_v16, %v547_v16 }
  0xac   : > { %v546_v21 = vmul.f32 0.03125, %v541_v19  ;;  %v553_v23 = vmul.f32 %v549_v17, %v549_v17 }
  0xad   : > { %v548_v24 = vsub.f32 %v523_v6, %v544_v20  ;;  %v555_v26 = vsel %vm529_vm1, %v551_v22, 0.0 }
  0xae   : > { %v550_v25 = vsub.f32 %v525_v9, %v546_v21  ;;  %556 = vadd.xlane.f32.xlu0 %v555_v26  ;;  %v561_v27 = vsel %vm529_vm1, %v553_v23, 0.0 }
  0xaf   : > { %v552_v28 = vmul.f32 %v548_v24, %v548_v24 }
  0xb0   : > { %v554_v29 = vmul.f32 %v550_v25, %v550_v25 }
  0xb1   : > { %v558_v30 = vsel %vm529_vm1, %v552_v28, 0.0 }
  0xb2   : > { %562 = vadd.xlane.f32.xlu0 %v561_v27  ;;  %559 = vadd.xlane.f32.xlu1 %v558_v30  ;;  %v564_v31 = vsel %vm529_vm1, %v554_v29, 0.0 }
  0xb6   : > { %565 = vadd.xlane.f32.xlu1 %v564_v31 }
 0x13b   : > { %v557_v34 = vpop.xlane.xlu0 %556 }
 0x13c   : > { %v567_v35 = vmul.f32 0.03125, %v557_v34 }
 0x13e   : > { %v571_v36 = vadd.f32 1e-05, %v567_v35 }
 0x13f   : > { %v560_v37 = vpop.xlane.xlu1 %559  ;;  %v563_v38 = vpop.xlane.xlu0 %562 }
 0x140   : > { %3976 = vrsqrt.f32 %v571_v36  ;;  %v568_v40 = vmul.f32 0.03125, %v560_v37  ;;  %v569_v41 = vmul.f32 0.03125, %v563_v38 }
 0x142   : > { %v572_v42 = vadd.f32 1e-05, %v568_v40  ;;  %v573_v43 = vadd.f32 1e-05, %v569_v41 }
 0x143   : > { %v566_v44 = vpop.xlane.xlu1 %565 }
 0x144   : > { %3978 = vrsqrt.f32 %v572_v42  ;;  %v570_v46 = vmul.f32 0.03125, %v566_v44 }
 0x145   : > { %3980 = vrsqrt.f32 %v573_v43 }
 0x146   : > { %v574_v47 = vadd.f32 1e-05, %v570_v46 }
 0x148   : > { %3982 = vrsqrt.f32 %v574_v47 }
 0x14a   : > { %v3977_v50 = vpop.eup %3976 }
 0x14b   : > { %v579_v51 = vmul.f32 %v3977_v50, %v547_v16 }
 0x14d   : > { %v587_v57 = vmul.f32 %v586_v52, %v579_v51 }
 0x14e   : > { %v3979_v54 = vpop.eup %3978 }
 0x14f   : > { %v3981_v55 = vpop.eup %3980  ;;  %v580_v56 = vmul.f32 %v3979_v54, %v548_v24  ;;  %v595_v62 = vadd.f32 %v594_v58, %v587_v57 }
 0x150   : > { %v581_v59 = vmul.f32 %v3981_v55, %v549_v17 }
 0x151   : > { %v588_v60 = vmul.f32 %v586_v52, %v580_v56 }
 0x152   : > { %v3983_v61 = vpop.eup %3982  ;;  %v589_v1 = vmul.f32 %v586_v52, %v581_v59 }
 0x153   : > { %v596_v63 = vadd.f32 %v594_v58, %v588_v60  ;;  %v582_v0 = vmul.f32 %v3983_v61, %v550_v25 }
 0x154   : > { %v597_v4 = vadd.f32 %v594_v58, %v589_v1 }
 0x155   : > { %v599_v2 = vpack.c.bf16 %v596_v63, %v595_v62  ;;  %v590_v3 = vmul.f32 %v586_v52, %v582_v0 }
 0x157   : > { %3670 = vmatprep.mubr.msk.bf16.mxu1 %vm529_vm1, %v599_v2  ;;  %v598_v5 = vadd.f32 %v594_v58, %v590_v3 }
 0x159   : > { %v600_v6 = vpack.c.bf16 %v598_v5, %v597_v4 }
 0x15b   : > { %3671 = vmatmul.mubr.msk.bf16.vlgmr.msra.gmra.mrb[0].mxu1 %vm529_vm1, %v600_v6 }
 0x15c   : > { %3676 = vmatprep.mubr.msk.bf16.mxu1 %vm4168_vm2, %v4167_v7 }
 0x22e   : > { %v3672_v8 = vpop.f32.mrb[0].mxu1 }
 0x22f   : > { %v657_v9 = vpop.f32.mrb[1].mxu1 }
 0x230   : > { %v3673_v10 = vpop.f32.mrb[2].mxu1 }
 0x231   : > { %v4334_v11 = vpack.c.bf16 %v3673_v10, %v3672_v8  ;;  %v660_v12 = vpop.f32.mrb[3].mxu1 }
 0x232   : > { %v4336_v13 = vpack.c.bf16 %v660_v12, %v657_v9 }
 0x233   : > { %726 = vrot.lane.b32.xlu1 %v4334_v11, %s4169_s25 }
 0x234   : > { %675 = vrot.lane.b32.xlu0 %v4336_v13, %s4169_s25 }
 0x2a5   : > { %v727_v16 = vpop.permute.xlu1 %726 }
 0x2a6   : > { %v676_v14 = vpop.permute.xlu0 %675  ;;  %v732_v17 = vsel %vm677_vm3, %v727_v16, 0 }
 0x2a7   : > { %v682_v15 = vsel %vm677_vm3, %v676_v14, 0 }
 0x2a8   : > { %3675 = vmatpush3.bf16.xpose.msra.mxu1 %v682_v15 }
 0x2a9   : > { %3680 = vmatprep.subr.bf16.mxu1 %v4167_v7 }
 0x2af   : > { %3677 = vmatmul.mubr.msk.bf16.vlgmr.msra.gmra.mrb[4].mxu1 %vm677_vm3, %v4336_v13 }
 0x2b0   : > { %3681 = vmatpush3.bf16.xpose.msra.mxu1 %v732_v17  ;;  %3682 = vmatprep.mubr.msk.bf16.mxu1 %vm4168_vm2, %v4167_v7 }
 0x2b1   : > { %3686 = vmatprep.subr.bf16.mxu1 %v4167_v7 }
 0x2b7   : > { %3683 = vmatmul.mubr.msk.bf16.vlgmr.msra.gmra.mrb[8].mxu1 %vm677_vm3, %v4334_v11 }
 0x2b8   : > { %3688 = vmatprep.mubr.msk.bf16.mxu1 %vm4168_vm2, %v4167_v7 }
 0x382   : > { %v718_v18 = vpop.f32.mrb[4].mxu1 }
 0x383   : > { %v3678_v19 = vpop.f32.mrb[5].mxu1  ;;  %v776_v20 = vsel %vm775_vm4, %v718_v18, -inf }
 0x384   : > { %777 = vmax.xlane.f32.xlu1 %v776_v20  ;;  %v721_v21 = vpop.f32.mrb[6].mxu1 }
 0x385   : > { %v3679_v22 = vpop.f32.mrb[7].mxu1  ;;  %v779_v23 = vsel %vm775_vm4, %v721_v21, -inf }
 0x386   : > { %780 = vmax.xlane.f32.xlu0 %v779_v23 }
 0x38a   : > { %v768_v24 = vpop.f32.mrb[8].mxu1 }
 0x38b   : > { %v3684_v25 = vpop.f32.mrb[9].mxu1  ;;  %v782_v26 = vsel %vm775_vm4, %v768_v24, -inf }
 0x38c   : > { %783 = vmax.xlane.f32.xlu0 %v782_v26  ;;  %v771_v27 = vpop.f32.mrb[10].mxu1 }
 0x38d   : > { %v3685_v28 = vpop.f32.mrb[11].mxu1  ;;  %v785_v29 = vsel %vm775_vm4, %v771_v27, -inf }
 0x38e   : > { %786 = vmax.xlane.f32.xlu1 %v785_v29 }
 0x411   : > { %v778_v30 = vpop.xlane.xlu1 %777 }
 0x412   : > { %v788_v31 = vsub.f32 %v718_v18, %v778_v30 }
 0x413   : > { %v781_v32 = vpop.xlane.xlu0 %780 }
 0x414   : > { %v792_v33 = vmul.f32 1.442695, %v788_v31  ;;  %v789_v34 = vsub.f32 %v721_v21, %v781_v32 }
 0x416   : > { %3984 = vpow2.f32 %v792_v33  ;;  %v794_v35 = vmul.f32 1.442695, %v789_v34 }
 0x418   : > { %3986 = vpow2.f32 %v794_v35 }
 0x419   : > { %v784_v36 = vpop.xlane.xlu0 %783 }
 0x41a   : > { %v790_v37 = vsub.f32 %v768_v24, %v784_v36 }
 0x41b   : > { %v787_v46 = vpop.xlane.xlu1 %786 }
 0x41c   : > { %v796_v38 = vmul.f32 1.442695, %v790_v37  ;;  %v791_v47 = vsub.f32 %v771_v27, %v787_v46 }
 0x41e   : > { %3988 = vpow2.f32 %v796_v38  ;;  %v798_v48 = vmul.f32 1.442695, %v791_v47 }
 0x420   : > { %v3985_v39 = vpop.eup %3984  ;;  %3990 = vpow2.f32 %v798_v48 }
 0x421   : > { %v800_v40 = vsel %vm775_vm4, %v3985_v39, 0.0 }
 0x422   : > { %v3987_v41 = vpop.eup %3986  ;;  %801 = vadd.xlane.f32.xlu0 %v800_v40 }
 0x423   : > { %v803_v42 = vsel %vm775_vm4, %v3987_v41, 0.0 }
 0x424   : > { %804 = vadd.xlane.f32.xlu1 %v803_v42 }
 0x428   : > { %v3989_v43 = vpop.eup %3988 }
 0x429   : > { %v806_v44 = vsel %vm775_vm4, %v3989_v43, 0.0 }
 0x42a   : > { %807 = vadd.xlane.f32.xlu0 %v806_v44  ;;  %v3991_v49 = vpop.eup %3990 }
 0x42b   : > { %v809_v50 = vsel %vm775_vm4, %v3991_v49, 0.0 }
 0x435   : > { %869 = vrot.lane.b32.xlu1 %v4334_v11, %s4170_s12 }
 0x439   : > { %918 = vrot.lane.b32.xlu1 %v4336_v13, %s4171_s20 }
 0x440   : > { %822 = vrot.lane.b32.xlu0 %v4336_v13, %s4170_s12  ;;  %s4181_s12 = smov 16  }
 0x444   : > { %916 = vrot.lane.b32.xlu0 %v4336_v13, %s4172_s21 }
 0x45d   : > { %810 = vadd.xlane.f32.xlu1 %v809_v50 }
 0x46e   : > { %969 = vrot.lane.b32.xlu1 %v4334_v11, %s4171_s20 }
 0x472   : > { %967 = vrot.lane.b32.xlu1 %v4334_v11, %s4172_s21 }
 0x4af   : > { %v802_v51 = vpop.xlane.xlu0 %801 }
 0x4b0   : > { %3992 = vrcp.f32 %v802_v51 }
 0x4b1   : > { %v805_v52 = vpop.xlane.xlu1 %804 }
 0x4b2   : > { %3994 = vrcp.f32 %v805_v52 }
 0x4b5   : > { %v870_v53 = vpop.permute.xlu1 %869 }
 0x4b6   : > { %3693 = vmatpush3.bf16.msra.mxu0 %v870_v53 }
 0x4b7   : > { %v808_v54 = vpop.xlane.xlu0 %807  ;;  %3704 = vmatprep.subr.bf16.mxu0 %v4167_v7 }
 0x4b8   : > { %3996 = vrcp.f32 %v808_v54 }
 0x4b9   : > { %v919_v61 = vpop.permute.xlu1 %918 }
 0x4ba   : > { %v3993_v55 = vpop.eup %3992  ;;  %v924_v62 = vsel %vm677_vm3, %v919_v61, 0 }
 0x4bb   : > { %v823_v56 = vpop.permute.xlu0 %822  ;;  %v816_v58 = vmul.f32 %v3993_v55, %v3985_v39 }
 0x4bc   : > { %v3995_v57 = vpop.eup %3994  ;;  %3687 = vmatpush3.bf16.msra.mxu1 %v823_v56 }
 0x4bd   : > { %v817_v59 = vmul.f32 %v3995_v57, %v3987_v41  ;;  %3698 = vmatprep.subr.bf16.mxu1 %v4167_v7 }
 0x4bf   : > { %v820_v60 = vpack.c.bf16 %v817_v59, %v816_v58  ;;  %v917_v63 = vpop.permute.xlu0 %916 }
 0x4c1   : > { %3689 = vmatmul.mubr.msk.bf16.vlgmr.msra.gmra.mrb[12].mxu1 %vm775_vm4, %v820_v60 }
 0x4c2   : > { %3700 = vmatprep.mubr.msk.bf16.mxu1 %vm4168_vm2, %v4167_v7  ;;  %v3997_v1 = vpop.eup %3996 }
 0x4c3   : > { %v818_v3 = vmul.f32 %v3997_v1, %v3989_v43 }
 0x4c5   : > { %3699 = vmatpush3.bf16.xpose.msra.mxu1 %v924_v62 }
 0x4c6   : > { %3710 = vmatprep.subr.bf16.mxu1 %v4167_v7 }
 0x4cc   : > { %3701 = vmatmul.mubr.msk.bf16.vlgmr.msra.gmra.mrb[16].mxu1 %vm677_vm3, %v917_v63 }
 0x4cd   : > { %3712 = vmatprep.mubr.msk.bf16.mxu1 %vm4168_vm2, %v4167_v7 }
 0x4ea   : > { %v811_v0 = vpop.xlane.xlu1 %810 }
 0x4eb   : > { %3998 = vrcp.f32 %v811_v0 }
 0x4ee   : > { %v970_v5 = vpop.permute.xlu1 %969 }
 0x4ef   : > { %v975_v8 = vsel %vm677_vm3, %v970_v5, 0 }
 0x4f2   : > { %v968_v9 = vpop.permute.xlu1 %967 }
 0x4f5   : > { %v3999_v2 = vpop.eup %3998 }
 0x4f6   : > { %v819_v4 = vmul.f32 %v3999_v2, %v3991_v49 }
 0x4f8   : > { %v821_v6 = vpack.c.bf16 %v819_v4, %v818_v3 }
 0x4fa   : > { %3695 = vmatmul.mubr.msk.bf16.vlgmr.msra.gmra.mrb[0].mxu0 %vm775_vm4, %v821_v6 }
 0x4fb   : > { %3705 = vmatpush3.bf16.xpose.msra.mxu0 %v975_v8  ;;  %3706 = vmatprep.mubr.msk.bf16.mxu0 %vm4168_vm2, %v4167_v7 }
 0x4fc   : > { %3716 = vmatprep.subr.bf16.mxu0 %v4167_v7 }
 0x502   : > { %3707 = vmatmul.mubr.msk.bf16.vlgmr.msra.gmra.mrb[4].mxu0 %vm677_vm3, %v968_v9 }
 0x503   : > { %3718 = vmatprep.mubr.msk.bf16.mxu0 %vm4168_vm2, %v4167_v7 }
 0x594   : > { %v4390_v10 = vpop.f32.mrb[12].mxu1 }
 0x595   : > { %v3690_v12 = vpop.f32.mrb[13].mxu1 }
 0x596   : > { %v4392_v14 = vpop.f32.mrb[14].mxu1 }
 0x597   : > { %v3691_v15 = vpop.f32.mrb[15].mxu1 }
 0x59f   : > { %v960_v16 = vpop.f32.mrb[16].mxu1 }
 0x5a0   : > { %v3702_v17 = vpop.f32.mrb[17].mxu1  ;;  %v1018_v18 = vsel %vm775_vm4, %v960_v16, -inf }
 0x5a1   : > { %1019 = vmax.xlane.f32.xlu0 %v1018_v18  ;;  %v963_v19 = vpop.f32.mrb[18].mxu1 }
 0x5a2   : > { %v3703_v20 = vpop.f32.mrb[19].mxu1  ;;  %v1021_v21 = vsel %vm775_vm4, %v963_v19, -inf }
 0x5a3   : > { %1022 = vmax.xlane.f32.xlu1 %v1021_v21 }
 0x5cd   : > { %v4396_v22 = vpop.f32.mrb[0].mxu0 }
 0x5ce   : > { %v3696_v23 = vpop.f32.mrb[1].mxu0 }
 0x5cf   : > { %v4398_v24 = vpop.f32.mrb[2].mxu0 }
 0x5d0   : > { %v3697_v25 = vpop.f32.mrb[3].mxu0 }
 0x5d5   : > { %v1011_v26 = vpop.f32.mrb[4].mxu0 }
 0x5d6   : > { %v3708_v27 = vpop.f32.mrb[5].mxu0  ;;  %v1024_v28 = vsel %vm775_vm4, %v1011_v26, -inf }
 0x5d7   : > { %v1014_v29 = vpop.f32.mrb[6].mxu0  ;;  %1025 = vmax.xlane.f32.xlu0 %v1024_v28 }
 0x5d8   : > { %v3709_v30 = vpop.f32.mrb[7].mxu0  ;;  %v1027_v31 = vsel %vm775_vm4, %v1014_v29, -inf }
 0x5db   : > { %1028 = vmax.xlane.f32.xlu0 %v1027_v31 }
 0x62e   : > { %v1020_v32 = vpop.xlane.xlu0 %1019 }
 0x62f   : > { %v1030_v33 = vsub.f32 %v960_v16, %v1020_v32 }
 0x630   : > { %v1023_v34 = vpop.xlane.xlu1 %1022 }
 0x631   : > { %v1034_v35 = vmul.f32 1.442695, %v1030_v33  ;;  %v1031_v36 = vsub.f32 %v963_v19, %v1023_v34 }
 0x633   : > { %4000 = vpow2.f32 %v1034_v35  ;;  %v1036_v37 = vmul.f32 1.442695, %v1031_v36 }
 0x635   : > { %4002 = vpow2.f32 %v1036_v37 }
 0x63d   : > { %v4001_v38 = vpop.eup %4000 }
 0x63e   : > { %v1042_v39 = vsel %vm775_vm4, %v4001_v38, 0.0 }
 0x63f   : > { %v4003_v40 = vpop.eup %4002  ;;  %1043 = vadd.xlane.f32.xlu0 %v1042_v39 }
 0x640   : > { %v1045_v41 = vsel %vm775_vm4, %v4003_v40, 0.0 }
 0x641   : > { %1046 = vadd.xlane.f32.xlu1 %v1045_v41 }
 0x652   : > { %1111 = vrot.lane.b32.xlu1 %v4334_v11, %s4173_s24 }
 0x656   : > { %1160 = vrot.lane.b32.xlu1 %v4336_v13, %s4174_s26 }
 0x664   : > { %v1026_v42 = vpop.xlane.xlu0 %1025 }
 0x665   : > { %v1032_v43 = vsub.f32 %v1011_v26, %v1026_v42 }
 0x667   : > { %v1038_v44 = vmul.f32 1.442695, %v1032_v43 }
 0x668   : > { %v1029_v46 = vpop.xlane.xlu0 %1028 }
 0x669   : > { %4004 = vpow2.f32 %v1038_v44  ;;  %v1033_v47 = vsub.f32 %v1014_v29, %v1029_v46 }
 0x66b   : > { %v1040_v48 = vmul.f32 1.442695, %v1033_v47 }
 0x66d   : > { %4006 = vpow2.f32 %v1040_v48 }
 0x673   : > { %v4005_v49 = vpop.eup %4004 }
 0x674   : > { %v1048_v50 = vsel %vm775_vm4, %v4005_v49, 0.0 }
 0x675   : > { %1049 = vadd.xlane.f32.xlu0 %v1048_v50 }
 0x677   : > { %v4007_v51 = vpop.eup %4006 }
 0x678   : > { %v1051_v52 = vsel %vm775_vm4, %v4007_v51, 0.0 }
 0x67a   : > { %1052 = vadd.xlane.f32.xlu1 %v1051_v52 }
 0x68b   : > { %1064 = vrot.lane.b32.xlu0 %v4336_v13, %s4173_s24  ;;  %1211 = vrot.lane.b32.xlu1 %v4334_v11, %s4174_s26  ;;  %s4182_s24 = smov 24  }
 0x68f   : > { %1158 = vrot.lane.b32.xlu0 %v4336_v13, %s4175_s19  ;;  %1209 = vrot.lane.b32.xlu1 %v4334_v11, %s4175_s19 }
 0x6cc   : > { %v1044_v55 = vpop.xlane.xlu0 %1043 }
 0x6ce   : > { %v1047_v53 = vpop.xlane.xlu1 %1046 }
 0x6cf   : > { %4008 = vrcp.f32 %v1047_v53 }
 0x6d0   : > { %4010 = vrcp.f32 %v1044_v55 }
 0x6d2   : > { %v1112_v54 = vpop.permute.xlu1 %1111 }
 0x6d3   : > { %3717 = vmatpush3.bf16.msra.mxu0 %v1112_v54 }
 0x6d4   : > { %3728 = vmatprep.subr.bf16.mxu0 %v4167_v7 }
 0x6d6   : > { %v1161_v59 = vpop.permute.xlu1 %1160 }
 0x6d7   : > { %v1166_v1 = vsel %vm677_vm3, %v1161_v59, 0 }
 0x6d9   : > { %v4009_v56 = vpop.eup %4008 }
 0x6da   : > { %v4011_v58 = vpop.eup %4010  ;;  %v1059_v60 = vmul.f32 %v4009_v56, %v4003_v40 }
 0x6db   : > { %v1058_v61 = vmul.f32 %v4011_v58, %v4001_v38 }
 0x6dd   : > { %v1062_v0 = vpack.c.bf16 %v1059_v60, %v1058_v61 }
 0x702   : > { %v1050_v57 = vpop.xlane.xlu0 %1049 }
 0x703   : > { %4012 = vrcp.f32 %v1050_v57 }
 0x706   : > { %v1065_v62 = vpop.permute.xlu0 %1064 }
 0x707   : > { %3711 = vmatpush3.bf16.msra.mxu1 %v1065_v62  ;;  %v1053_v63 = vpop.xlane.xlu1 %1052 }
 0x708   : > { %4014 = vrcp.f32 %v1053_v63  ;;  %3722 = vmatprep.subr.bf16.mxu1 %v4167_v7 }
 0x70a   : > { %3713 = vmatmul.mubr.msk.bf16.vlgmr.msra.gmra.mrb[20].mxu1 %vm775_vm4, %v1062_v0  ;;  %v1159_v9 = vpop.permute.xlu0 %1158 }
 0x70b   : > { %3724 = vmatprep.mubr.msk.bf16.mxu1 %vm4168_vm2, %v4167_v7  ;;  %v1212_v6 = vpop.permute.xlu1 %1211 }
 0x70c   : > { %v1217_v12 = vsel %vm677_vm3, %v1212_v6, 0 }
 0x70d   : > { %v4013_v2 = vpop.eup %4012 }
 0x70e   : > { %v1060_v4 = vmul.f32 %v4013_v2, %v4005_v49 }
 0x70f   : > { %v1210_v15 = vpop.permute.xlu1 %1209 }
 0x710   : > { %3723 = vmatpush3.bf16.xpose.msra.mxu1 %v1166_v1 }
 0x711   : > { %3734 = vmatprep.subr.bf16.mxu1 %v4167_v7 }
 0x712   : > { %v4015_v3 = vpop.eup %4014 }
 0x713   : > { %v1061_v5 = vmul.f32 %v4015_v3, %v4007_v51 }
 0x715   : > { %v1063_v8 = vpack.c.bf16 %v1061_v5, %v1060_v4 }
 0x717   : > { %3719 = vmatmul.mubr.msk.bf16.vlgmr.msra.gmra.mrb[8].mxu0 %vm775_vm4, %v1063_v8  ;;  %3725 = vmatmul.mubr.msk.bf16.vlgmr.msra.gmra.mrb[24].mxu1 %vm677_vm3, %v1159_v9 }
 0x718   : > { %3729 = vmatpush3.bf16.xpose.msra.mxu0 %v1217_v12  ;;  %3730 = vmatprep.mubr.msk.bf16.mxu0 %vm4168_vm2, %v4167_v7 }
 0x719   : > { %3740 = vmatprep.subr.bf16.mxu0 %v4167_v7  ;;  %3736 = vmatprep.mubr.msk.bf16.mxu1 %vm4168_vm2, %v4167_v7 }
 0x71f   : > { %3731 = vmatmul.mubr.msk.bf16.vlgmr.msra.gmra.mrb[12].mxu0 %vm677_vm3, %v1210_v15 }
 0x720   : > { %3742 = vmatprep.mubr.msk.bf16.mxu0 %vm4168_vm2, %v4167_v7 }
 0x7dd   : > { %v4434_v16 = vpop.f32.mrb[20].mxu1 }
 0x7de   : > { %v3714_v17 = vpop.f32.mrb[21].mxu1 }
 0x7df   : > { %v4436_v18 = vpop.f32.mrb[22].mxu1 }
 0x7e0   : > { %v3715_v19 = vpop.f32.mrb[23].mxu1 }
 0x7ea   : > { %v4438_v20 = vpop.f32.mrb[8].mxu0  ;;  %v1202_v21 = vpop.f32.mrb[24].mxu1 }
 0x7eb   : > { %v3720_v23 = vpop.f32.mrb[9].mxu0  ;;  %v3726_v25 = vpop.f32.mrb[25].mxu1  ;;  %v1260_v26 = vsel %vm775_vm4, %v1202_v21, -inf }
 0x7ec   : > { %v4441_v27 = vpop.f32.mrb[10].mxu0  ;;  %1261 = vmax.xlane.f32.xlu0 %v1260_v26  ;;  %v1205_v28 = vpop.f32.mrb[26].mxu1 }
 0x7ed   : > { %v3721_v29 = vpop.f32.mrb[11].mxu0  ;;  %v3727_v30 = vpop.f32.mrb[27].mxu1  ;;  %v1263_v31 = vsel %vm775_vm4, %v1205_v28, -inf }
 0x7ee   : > { %1264 = vmax.xlane.f32.xlu1 %v1263_v31 }
 0x7f2   : > { %v1253_v32 = vpop.f32.mrb[12].mxu0 }
 0x7f3   : > { %v3732_v33 = vpop.f32.mrb[13].mxu0  ;;  %v1266_v34 = vsel %vm775_vm4, %v1253_v32, -inf }
 0x7f4   : > { %v1256_v35 = vpop.f32.mrb[14].mxu0  ;;  %1267 = vmax.xlane.f32.xlu0 %v1266_v34 }
 0x7f5   : > { %v3733_v36 = vpop.f32.mrb[15].mxu0  ;;  %v1269_v37 = vsel %vm775_vm4, %v1256_v35, -inf }
 0x7f8   : > { %1270 = vmax.xlane.f32.xlu0 %v1269_v37 }
 0x879   : > { %v1262_v38 = vpop.xlane.xlu0 %1261 }
 0x87a   : > { %v1272_v39 = vsub.f32 %v1202_v21, %v1262_v38 }
 0x87b   : > { %v1265_v40 = vpop.xlane.xlu1 %1264 }
 0x87c   : > { %v1276_v41 = vmul.f32 1.442695, %v1272_v39  ;;  %v1273_v42 = vsub.f32 %v1205_v28, %v1265_v40 }
 0x87e   : > { %4016 = vpow2.f32 %v1276_v41  ;;  %v1278_v43 = vmul.f32 1.442695, %v1273_v42 }
 0x880   : > { %4018 = vpow2.f32 %v1278_v43 }
 0x881   : > { %v1268_v44 = vpop.xlane.xlu0 %1267 }
 0x882   : > { %v1274_v46 = vsub.f32 %v1253_v32, %v1268_v44 }
 0x884   : > { %v1280_v47 = vmul.f32 1.442695, %v1274_v46 }
 0x885   : > { %v1271_v54 = vpop.xlane.xlu0 %1270 }
 0x886   : > { %4020 = vpow2.f32 %v1280_v47  ;;  %v1275_v55 = vsub.f32 %v1256_v35, %v1271_v54 }
 0x888   : > { %v4017_v48 = vpop.eup %4016  ;;  %v1282_v56 = vmul.f32 1.442695, %v1275_v55 }
 0x889   : > { %v1284_v49 = vsel %vm775_vm4, %v4017_v48, 0.0 }
 0x88a   : > { %v4019_v50 = vpop.eup %4018  ;;  %1285 = vadd.xlane.f32.xlu0 %v1284_v49  ;;  %4022 = vpow2.f32 %v1282_v56 }
 0x88b   : > { %v1287_v51 = vsel %vm775_vm4, %v4019_v50, 0.0 }
 0x88c   : > { %1288 = vadd.xlane.f32.xlu1 %v1287_v51 }
 0x890   : > { %v4021_v52 = vpop.eup %4020 }
 0x891   : > { %v1290_v53 = vsel %vm775_vm4, %v4021_v52, 0.0 }
 0x892   : > { %1291 = vadd.xlane.f32.xlu0 %v1290_v53 }
 0x894   : > { %v4023_v57 = vpop.eup %4022 }
 0x895   : > { %v1293_v58 = vsel %vm775_vm4, %v4023_v57, 0.0 }
 0x89d   : > { %1353 = vrot.lane.b32.xlu1 %v4334_v11, %s4176_s27 }
 0x8a1   : > { %1402 = vrot.lane.b32.xlu1 %v4336_v13, %s4177_s16 }
 0x8a8   : > { %1306 = vrot.lane.b32.xlu0 %v4336_v13, %s4176_s27 }
 0x8ac   : > { %1400 = vrot.lane.b32.xlu0 %v4336_v13, %s4178_s29 }
 0x8c5   : > { %1294 = vadd.xlane.f32.xlu1 %v1293_v58 }
 0x8d6   : > { %1453 = vrot.lane.b32.xlu1 %v4334_v11, %s4177_s16 }
 0x8da   : > { %1451 = vrot.lane.b32.xlu1 %v4334_v11, %s4178_s29 }
 0x917   : > { %v1286_v59 = vpop.xlane.xlu0 %1285 }
 0x918   : > { %4024 = vrcp.f32 %v1286_v59 }
 0x919   : > { %v1289_v60 = vpop.xlane.xlu1 %1288 }
 0x91a   : > { %4026 = vrcp.f32 %v1289_v60 }
 0x91d   : > { %v1354_v61 = vpop.permute.xlu1 %1353 }
 0x91e   : > { %3741 = vmatpush3.bf16.msra.mxu0 %v1354_v61 }
 0x91f   : > { %v1292_v62 = vpop.xlane.xlu0 %1291  ;;  %3752 = vmatprep.subr.bf16.mxu0 %v4167_v7 }
 0x920   : > { %4028 = vrcp.f32 %v1292_v62 }
 0x921   : > { %v1403_v5 = vpop.permute.xlu1 %1402 }
 0x922   : > { %v4025_v63 = vpop.eup %4024  ;;  %v1408_v6 = vsel %vm677_vm3, %v1403_v5, 0 }
 0x923   : > { %v1307_v0 = vpop.permute.xlu0 %1306  ;;  %v1300_v2 = vmul.f32 %v4025_v63, %v4017_v48 }
 0x924   : > { %v4027_v1 = vpop.eup %4026  ;;  %3735 = vmatpush3.bf16.msra.mxu1 %v1307_v0 }
 0x925   : > { %v1301_v3 = vmul.f32 %v4027_v1, %v4019_v50  ;;  %3746 = vmatprep.subr.bf16.mxu1 %v4167_v7 }
 0x927   : > { %v1304_v4 = vpack.c.bf16 %v1301_v3, %v1300_v2  ;;  %v1401_v8 = vpop.permute.xlu0 %1400 }
 0x929   : > { %3737 = vmatmul.mubr.msk.bf16.vlgmr.msra.gmra.mrb[28].mxu1 %vm775_vm4, %v1304_v4 }
 0x92a   : > { %3748 = vmatprep.mubr.msk.bf16.mxu1 %vm4168_vm2, %v4167_v7  ;;  %v4029_v12 = vpop.eup %4028 }
 0x92b   : > { %v1302_v17 = vmul.f32 %v4029_v12, %v4021_v52 }
 0x92d   : > { %3747 = vmatpush3.bf16.xpose.msra.mxu1 %v1408_v6 }
 0x92e   : > { %3758 = vmatprep.subr.bf16.mxu1 %v4167_v7 }
 0x934   : > { %3749 = vmatmul.mubr.msk.bf16.vlgmr.msra.gmra.mrb[32].mxu1 %vm677_vm3, %v1401_v8 }
 0x935   : > { %3760 = vmatprep.mubr.msk.bf16.mxu1 %vm4168_vm2, %v4167_v7 }
 0x952   : > { %v1295_v9 = vpop.xlane.xlu1 %1294 }
 0x953   : > { %4030 = vrcp.f32 %v1295_v9 }
 0x956   : > { %v1454_v21 = vpop.permute.xlu1 %1453 }
 0x957   : > { %v1459_v25 = vsel %vm677_vm3, %v1454_v21, 0 }
 0x95a   : > { %v1452_v26 = vpop.permute.xlu1 %1451 }
 0x95d   : > { %v4031_v15 = vpop.eup %4030 }
 0x95e   : > { %v1303_v19 = vmul.f32 %v4031_v15, %v4023_v57 }
 0x960   : > { %v1305_v23 = vpack.c.bf16 %v1303_v19, %v1302_v17 }
 0x962   : > { %3743 = vmatmul.mubr.msk.bf16.vlgmr.msra.gmra.mrb[16].mxu0 %vm775_vm4, %v1305_v23 }
 0x963   : > { %3753 = vmatpush3.bf16.xpose.msra.mxu0 %v1459_v25  ;;  %3754 = vmatprep.mubr.msk.bf16.mxu0 %vm4168_vm2, %v4167_v7 }
 0x964   : > { %3764 = vmatprep.subr.bf16.mxu0 %v4167_v7 }
 0x96a   : > { %3755 = vmatmul.mubr.msk.bf16.vlgmr.msra.gmra.mrb[20].mxu0 %vm677_vm3, %v1452_v26 }
 0x96b   : > { %3766 = vmatprep.mubr.msk.bf16.mxu0 %vm4168_vm2, %v4167_v7 }
 0x9fc   : > { %v1346_v28 = vpop.f32.mrb[28].mxu1 }
 0x9fd   : > { %v3738_v29 = vpop.f32.mrb[29].mxu1 }
 0x9fe   : > { %v1349_v30 = vpop.f32.mrb[30].mxu1 }
 0x9ff   : > { %v3739_v31 = vpop.f32.mrb[31].mxu1 }
 0xa07   : > { %v1444_v32 = vpop.f32.mrb[32].mxu1 }
 0xa08   : > { %v3750_v33 = vpop.f32.mrb[33].mxu1  ;;  %v1502_v34 = vsel %vm775_vm4, %v1444_v32, -inf }
 0xa09   : > { %1503 = vmax.xlane.f32.xlu0 %v1502_v34  ;;  %v1447_v35 = vpop.f32.mrb[34].mxu1 }
 0xa0a   : > { %v3751_v36 = vpop.f32.mrb[35].mxu1  ;;  %v1505_v37 = vsel %vm775_vm4, %v1447_v35, -inf }
 0xa0b   : > { %1506 = vmax.xlane.f32.xlu1 %v1505_v37 }
 0xa35   : > { %v1393_v38 = vpop.f32.mrb[16].mxu0 }
 0xa36   : > { %v3744_v39 = vpop.f32.mrb[17].mxu0 }
 0xa37   : > { %v1396_v40 = vpop.f32.mrb[18].mxu0 }
 0xa38   : > { %v3745_v41 = vpop.f32.mrb[19].mxu0 }
 0xa3d   : > { %v1495_v42 = vpop.f32.mrb[20].mxu0 }
 0xa3e   : > { %v3756_v43 = vpop.f32.mrb[21].mxu0  ;;  %v1508_v44 = vsel %vm775_vm4, %v1495_v42, -inf }
 0xa3f   : > { %v1498_v46 = vpop.f32.mrb[22].mxu0  ;;  %1509 = vmax.xlane.f32.xlu0 %v1508_v44 }
 0xa40   : > { %v3757_v47 = vpop.f32.mrb[23].mxu0  ;;  %v1511_v48 = vsel %vm775_vm4, %v1498_v46, -inf }
 0xa43   : > { %1512 = vmax.xlane.f32.xlu0 %v1511_v48 }
 0xa96   : > { %v1504_v49 = vpop.xlane.xlu0 %1503 }
 0xa97   : > { %v1514_v50 = vsub.f32 %v1444_v32, %v1504_v49  ;;  %v4136_v49 = vld [vmem:[#allocation2] sm:$0xff] }
 0xa98   : > { %v1507_v51 = vpop.xlane.xlu1 %1506 }
 0xa99   : > { %v1518_v52 = vmul.f32 1.442695, %v1514_v50  ;;  %v1515_v53 = vsub.f32 %v1447_v35, %v1507_v51 }
 0xa9b   : > { %4032 = vpow2.f32 %v1518_v52  ;;  %v1520_v54 = vmul.f32 1.442695, %v1515_v53  ;;  %v4137_v53 = vld [vmem:[#allocation2 + $0x8] sm:$0xff] }
 0xa9d   : > { %4034 = vpow2.f32 %v1520_v54 }
 0xaa5   : > { %v4033_v55 = vpop.eup %4032 }
 0xaa6   : > { %v1526_v56 = vsel %vm775_vm4, %v4033_v55, 0.0 }
 0xaa7   : > { %v4035_v57 = vpop.eup %4034  ;;  %1527 = vadd.xlane.f32.xlu0 %v1526_v56 }
 0xaa8   : > { %v1529_v58 = vsel %vm775_vm4, %v4035_v57, 0.0 }
 0xaa9   : > { %1530 = vadd.xlane.f32.xlu1 %v1529_v58 }
 0xacc   : > { %v1510_v59 = vpop.xlane.xlu0 %1509 }
 0xacd   : > { %v1516_v60 = vsub.f32 %v1495_v42, %v1510_v59 }
 0xacf   : > { %v1522_v61 = vmul.f32 1.442695, %v1516_v60 }
 0xad0   : > { %v1513_v62 = vpop.xlane.xlu0 %1512 }
 0xad1   : > { %4036 = vpow2.f32 %v1522_v61  ;;  %v1517_v63 = vsub.f32 %v1498_v46, %v1513_v62  ;;  %v4138_v61 = vld [vmem:[#allocation2 + $0x10] sm:$0xff] }
 0xad3   : > { %v1524_v0 = vmul.f32 1.442695, %v1517_v63 }
 0xad5   : > { %4038 = vpow2.f32 %v1524_v0 }
 0xadb   : > { %v4037_v1 = vpop.eup %4036 }
 0xadc   : > { %v1532_v2 = vsel %vm775_vm4, %v4037_v1, 0.0 }
 0xadd   : > { %1533 = vadd.xlane.f32.xlu0 %v1532_v2 }
 0xadf   : > { %v4039_v3 = vpop.eup %4038 }
 0xae0   : > { %v1535_v4 = vsel %vm775_vm4, %v4039_v3, 0.0 }
 0xae1   : > { %1536 = vadd.xlane.f32.xlu1 %v1535_v4  ;;  %v3965_v4 = vld [vmem:[%s4281_s28 + $0x8] sm:$0xff]  }
 0xaf2   : > { %1595 = vrot.lane.b32.xlu1 %v4334_v11, %s4179_s2 }
 0xaf3   : > { %1548 = vrot.lane.b32.xlu0 %v4336_v13, %s4179_s2 }
 0xaf6   : > { %1646 = vrot.lane.b32.xlu1 %v4434_v16, %s4180_s30 }
 0xaf7   : > { %1650 = vrot.lane.b32.xlu0 %v4438_v20, %s4180_s30 }
 0xafa   : > { %1648 = vrot.lane.b32.xlu1 %v4436_v18, %s4180_s30 }
 0xafb   : > { %1662 = vrot.lane.b32.xlu0 %v1346_v28, %s4181_s12 }
 0xafe   : > { %1652 = vrot.lane.b32.xlu1 %v4441_v27, %s4180_s30 }
 0xaff   : > { %1666 = vrot.lane.b32.xlu0 %v1393_v38, %s4181_s12 }
 0xb02   : > { %1664 = vrot.lane.b32.xlu1 %v1349_v30, %s4181_s12 }
 0xb06   : > { %1668 = vrot.lane.b32.xlu1 %v1396_v40, %s4181_s12 }
 0xb34   : > { %v1528_v13 = vpop.xlane.xlu0 %1527 }
 0xb36   : > { %v1531_v11 = vpop.xlane.xlu1 %1530 }
 0xb37   : > { %4040 = vrcp.f32 %v1531_v11 }
 0xb38   : > { %4042 = vrcp.f32 %v1528_v13 }
 0xb41   : > { %v4041_v16 = vpop.eup %4040 }
 0xb42   : > { %v4043_v5 = vpop.eup %4042  ;;  %v1543_v18 = vmul.f32 %v4041_v16, %v4035_v57 }
 0xb43   : > { %v1542_v6 = vmul.f32 %v4043_v5, %v4033_v55 }
 0xb45   : > { %v1546_v27 = vpack.c.bf16 %v1543_v18, %v1542_v6 }
 0xb6a   : > { %v1534_v20 = vpop.xlane.xlu0 %1533 }
 0xb6b   : > { %4044 = vrcp.f32 %v1534_v20 }
 0xb6e   : > { %v1549_v8 = vpop.permute.xlu0 %1548  ;;  %v1537_v9 = vpop.xlane.xlu1 %1536 }
 0xb6f   : > { %4046 = vrcp.f32 %v1537_v9  ;;  %3759 = vmatpush3.bf16.msra.mxu1 %v1549_v8 }
 0xb72   : > { %3761 = vmatmul.mubr.msk.bf16.vlgmr.msra.gmra.mrb[36].mxu1 %vm775_vm4, %v1546_v27  ;;  %v1596_v12 = vpop.permute.xlu1 %1595  ;;  %v1651_v36 = vpop.permute.xlu0 %1650 }
 0xb73   : > { %3765 = vmatpush3.bf16.msra.mxu0 %v1596_v12  ;;  %v1692_v55 = vsel %vm677_vm3, %v4396_v22, %v1651_v36 }
 0xb74   : > { %3778 = vmatprep.subr.bf16.mxu0 %v4167_v7 }
 0xb75   : > { %v4045_v15 = vpop.eup %4044 }
 0xb76   : > { %v1544_v19 = vmul.f32 %v4045_v15, %v4037_v1  ;;  %v1647_v34 = vpop.permute.xlu1 %1646  ;;  %v1663_v38 = vpop.permute.xlu0 %1662  ;;  %v4139_v1 = vld [vmem:[#allocation2 + $0x18] sm:$0xff] }
 0xb77   : > { %v1690_v41 = vsel %vm677_vm3, %v4390_v10, %v1647_v34 }
 0xb78   : > { %v1694_v43 = vsel %vm775_vm4, %v1690_v41, %v1663_v38  ;;  %v1761_v41 = vsub.s32 2, %v4321_v45 }
 0xb79   : > { %v4047_v17 = vpop.eup %4046 }
 0xb7a   : > { %v1545_v21 = vmul.f32 %v4047_v17, %v4039_v3  ;;  %v1649_v35 = vpop.permute.xlu1 %1648  ;;  %v1667_v40 = vpop.permute.xlu0 %1666  ;;  %v3964_v3 = vld [vmem:[%s4281_s28] sm:$0xff]  }
 0xb7b   : > { %v1691_v46 = vsel %vm677_vm3, %v4392_v14, %v1649_v35  ;;  %v1696_v56 = vsel %vm775_vm4, %v1692_v55, %v1667_v40  ;;  %3770 = vmatprep.subr.bf16.mxu1 %v3964_v3  ;;  %v4183_v35 = vmov 1983009808   ;;  %v527_v40 = vld [vmem:[%s4864_s1 + $0x2] sm:$0x3] }
 0xb7c   : > { %v1547_v23 = vpack.c.bf16 %v1545_v21, %v1544_v19  ;;  %3771 = vmatpush3.bf16.msra.mxu1 %v3964_v3  ;;  %v1852_v36 = vunpack.c.l.s4 %v4183_v35 }
 0xb7d   : > { %3772 = vmatprep.subr.bf16.mxu1 %v3965_v4 }
 0xb7e   : > { %3767 = vmatmul.mubr.msk.bf16.vlgmr.msra.gmra.mrb[24].mxu0 %vm775_vm4, %v1547_v23  ;;  %v1653_v37 = vpop.permute.xlu1 %1652  ;;  %v1853_v38 = vunpack.c.0.s8 %v1852_v36 }
 0xb7f   : > { %3782 = vmatprep.mubr.msk.bf16.mxu0 %vm4168_vm2, %v4167_v7  ;;  %v1693_v58 = vsel %vm677_vm3, %v4398_v24, %v1653_v37 }
 0xb80   : > { %3773 = vmatpush3.bf16.msra.mxu1 %v3965_v4 }
 0xb81   : > { %3786 = vmatprep.subr.bf16.mxu1 %v4167_v7 }
 0xb82   : > { %v1665_v39 = vpop.permute.xlu1 %1664 }
 0xb83   : > { %v1695_v48 = vsel %vm775_vm4, %v1691_v46, %v1665_v39  ;;  %v526_v39 = vld [vmem:[%s4864_s1] sm:$0x3] }
 0xb86   : > { %v1669_v42 = vpop.permute.xlu1 %1668 }
 0xb87   : > { %v1697_v60 = vsel %vm775_vm4, %v1693_v58, %v1669_v42 }
 0xc45   : > { %v1588_v25 = vpop.f32.mrb[36].mxu1 }
 0xc46   : > { %1678 = vrot.lane.b32.xlu0 %v1588_v25, %s4182_s24  ;;  %v3762_v26 = vpop.f32.mrb[37].mxu1 }
 0xc47   : > { %v1591_v28 = vpop.f32.mrb[38].mxu1 }
 0xc48   : > { %1680 = vrot.lane.b32.xlu1 %v1591_v28, %s4182_s24  ;;  %v3763_v29 = vpop.f32.mrb[39].mxu1 }
 0xc51   : > { %v1635_v30 = vpop.f32.mrb[24].mxu0 }
 0xc52   : > { %v3768_v31 = vpop.f32.mrb[25].mxu0  ;;  %1682 = vrot.lane.b32.xlu0 %v1635_v30, %s4182_s24 }
 0xc53   : > { %v1638_v32 = vpop.f32.mrb[26].mxu0 }
 0xc54   : > { %v3769_v33 = vpop.f32.mrb[27].mxu0  ;;  %1684 = vrot.lane.b32.xlu1 %v1638_v32, %s4182_s24 }
 0xcb8   : > { %v1679_v44 = vpop.permute.xlu0 %1678 }
 0xcb9   : > { %v1699_v47 = vsel %vm1698_vm5, %v1694_v43, %v1679_v44  ;;  %v1850_v43 = vcombine.low %v526_v39, %v527_v40  ;;  %v1856_v44 = vsub.s32 %v1853_v38, %v4321_v45 }
 0xcba   : > { %v4516_v50 = vadd.f32 %v4136_v49, %v1699_v47  ;;  %v1681_v51 = vpop.permute.xlu1 %1680  ;;  %v4140_v47 = vld [vmem:[%s4271_s22] sm:$0x7f]  ;;  %v1769_v49 = vsub.s32 3, %v4321_v45 }
 0xcbb   : > { %v1700_v52 = vsel %vm1698_vm5, %v1695_v48, %v1681_v51  ;;  %v1762_v48 = vrot.slane %v4140_v47, %v1761_v41  ;;  %v1857_v55 = vrot.slane %v1850_v43, %v1856_v44 }
 0xcbc   : > { %v4519_v10 = vadd.f32 %v4137_v53, %v1700_v52  ;;  %v1707_v54 = vsel %vm529_vm1, %v4516_v50, 0.0 }
 0xcbd   : > { %1708 = vadd.xlane.f32.xlu0 %v1707_v54 }
 0xcbe   : > { %v1710_v14 = vsel %vm529_vm1, %v4519_v10, 0.0 }
 0xcbf   : > { %1711 = vadd.xlane.f32.xlu1 %v1710_v14 }
 0xcc4   : > { %v1683_v57 = vpop.permute.xlu0 %1682 }
 0xcc5   : > { %v1701_v59 = vsel %vm1698_vm5, %v1696_v56, %v1683_v57 }
 0xcc6   : > { %v4532_v62 = vadd.f32 %v4138_v61, %v1701_v59  ;;  %v1685_v63 = vpop.permute.xlu1 %1684 }
 0xcc7   : > { %v1702_v0 = vsel %vm1698_vm5, %v1697_v60, %v1685_v63  ;;  %v1770_v60 = vrot.slane %v4140_v47, %v1769_v49 }
 0xcc8   : > { %v4535_v22 = vadd.f32 %v4139_v1, %v1702_v0  ;;  %v1713_v2 = vsel %vm529_vm1, %v4532_v62, 0.0  ;;  %v1859_v1 = vpack.c.bf16 %v1857_v55, %v1857_v55 }
 0xcc9   : > { %1714 = vadd.xlane.f32.xlu0 %v1713_v2 }
 0xcca   : > { %v1716_v24 = vsel %vm529_vm1, %v4535_v22, 0.0 }
 0xccd   : > { %1717 = vadd.xlane.f32.xlu0 %v1716_v24 }
 0xd4a   : > { %v1709_v11 = vpop.xlane.xlu0 %1708 }
 0xd4b   : > { %v1719_v13 = vmul.f32 0.03125, %v1709_v11 }
 0xd4c   : > { %v1712_v16 = vpop.xlane.xlu1 %1711 }
 0xd4d   : > { %v1723_v20 = vsub.f32 %v4516_v50, %v1719_v13  ;;  %v1720_v5 = vmul.f32 0.03125, %v1712_v16 }
 0xd4f   : > { %v1724_v18 = vsub.f32 %v4519_v10, %v1720_v5  ;;  %v1727_v6 = vmul.f32 %v1723_v20, %v1723_v20 }
 0xd51   : > { %v1731_v8 = vsel %vm529_vm1, %v1727_v6, 0.0  ;;  %v1728_v9 = vmul.f32 %v1724_v18, %v1724_v18 }
 0xd52   : > { %1732 = vadd.xlane.f32.xlu0 %v1731_v8 }
 0xd53   : > { %v1734_v27 = vsel %vm529_vm1, %v1728_v9, 0.0 }
 0xd54   : > { %1735 = vadd.xlane.f32.xlu1 %v1734_v27 }
 0xd56   : > { %v1715_v12 = vpop.xlane.xlu0 %1714 }
 0xd57   : > { %v1721_v15 = vmul.f32 0.03125, %v1715_v12 }
 0xd59   : > { %v1725_v17 = vsub.f32 %v4532_v62, %v1721_v15 }
 0xd5a   : > { %v1718_v19 = vpop.xlane.xlu0 %1717 }
 0xd5b   : > { %v1722_v21 = vmul.f32 0.03125, %v1718_v19  ;;  %v1729_v23 = vmul.f32 %v1725_v17, %v1725_v17 }
 0xd5d   : > { %v1726_v25 = vsub.f32 %v4535_v22, %v1722_v21  ;;  %v1737_v26 = vsel %vm529_vm1, %v1729_v23, 0.0 }
 0xd5e   : > { %1738 = vadd.xlane.f32.xlu0 %v1737_v26 }
 0xd5f   : > { %v1730_v28 = vmul.f32 %v1726_v25, %v1726_v25 }
 0xd61   : > { %v1740_v29 = vsel %vm529_vm1, %v1730_v28, 0.0 }
 0xd62   : > { %1741 = vadd.xlane.f32.xlu1 %v1740_v29 }
 0xd73   : > { %1862 = vrot.lane.b32.xlu1 %v3965_v4, %s4169_s25 }
 0xd74   : > { %1860 = vrot.lane.b32.xlu0 %v3964_v3, %s4169_s25 }
 0xddf   : > { %v1733_v30 = vpop.xlane.xlu0 %1732 }
 0xde0   : > { %v1743_v31 = vmul.f32 0.03125, %v1733_v30 }
 0xde1   : > { %v1736_v32 = vpop.xlane.xlu1 %1735 }
 0xde2   : > { %v1747_v33 = vadd.f32 1e-05, %v1743_v31  ;;  %v1744_v34 = vmul.f32 0.03125, %v1736_v32 }
 0xde4   : > { %4048 = vrsqrt.f32 %v1747_v33  ;;  %v1748_v37 = vadd.f32 1e-05, %v1744_v34 }
 0xde6   : > { %4050 = vrsqrt.f32 %v1748_v37 }
 0xdeb   : > { %v1739_v42 = vpop.xlane.xlu0 %1738 }
 0xdec   : > { %v1745_v46 = vmul.f32 0.03125, %v1739_v42 }
 0xdee   : > { %v4049_v51 = vpop.eup %4048  ;;  %v1749_v52 = vadd.f32 1e-05, %v1745_v46 }
 0xdef   : > { %v1755_v53 = vmul.f32 %v4049_v51, %v1723_v20  ;;  %v1742_v54 = vpop.xlane.xlu1 %1741  ;;  %v1861_v14 = vpop.permute.xlu0 %1860 }
 0xdf0   : > { %v4051_v56 = vpop.eup %4050  ;;  %4052 = vrsqrt.f32 %v1749_v52  ;;  %v1746_v57 = vmul.f32 0.03125, %v1742_v54  ;;  %3779 = vmatpush3.bf16.msra.mxu0 %v1861_v14 }
 0xdf1   : > { %v1756_v58 = vmul.f32 %v4051_v56, %v1724_v18  ;;  %v1763_v59 = vmul.f32 %v1762_v48, %v1755_v53  ;;  %3780 = vmatprep.subr.bf16.mxu0 %v4167_v7 }
 0xdf2   : > { %v1750_v61 = vadd.f32 1e-05, %v1746_v57 }
 0xdf3   : > { %v1764_v63 = vmul.f32 %v1762_v48, %v1756_v58  ;;  %v1863_v0 = vpop.permute.xlu1 %1862  ;;  %v1771_v2 = vadd.f32 %v1770_v60, %v1763_v59 }
 0xdf4   : > { %4054 = vrsqrt.f32 %v1750_v61  ;;  %3781 = vmatpush3.bf16.msra.mxu0 %v1863_v0 }
 0xdf5   : > { %v1772_v24 = vadd.f32 %v1770_v60, %v1764_v63  ;;  %3792 = vmatprep.subr.bf16.mxu0 %v4167_v7 }
 0xdf7   : > { %v1775_v3 = vpack.c.bf16 %v1772_v24, %v1771_v2  ;;  %3783 = vmatmul.mubr.msk.bf16.vlgmr.msra.gmra.mrb[28].mxu0 %vm529_vm1, %v1859_v1 }
 0xdf8   : > { %3794 = vmatprep.mubr.msk.bf16.mxu0 %vm4168_vm2, %v4167_v7 }
 0xdf9   : > { %3774 = vmatprep.mubr.msk.bf16.mxu1 %vm529_vm1, %v1775_v3 }
 0xdfa   : > { %v4053_v4 = vpop.eup %4052 }
 0xdfb   : > { %v1757_v11 = vmul.f32 %v4053_v4, %v1725_v17 }
 0xdfd   : > { %v1765_v16 = vmul.f32 %v1762_v48, %v1757_v11 }
 0xdfe   : > { %v4055_v13 = vpop.eup %4054 }
 0xdff   : > { %v1758_v20 = vmul.f32 %v4055_v13, %v1726_v25  ;;  %v1773_v18 = vadd.f32 %v1770_v60, %v1765_v16 }
 0xe01   : > { %v1766_v5 = vmul.f32 %v1762_v48, %v1758_v20 }
 0xe03   : > { %v1774_v6 = vadd.f32 %v1770_v60, %v1766_v5 }
 0xe05   : > { %v1776_v8 = vpack.c.bf16 %v1774_v6, %v1773_v18 }
 0xe07   : > { %3775 = vmatmul.mubr.msk.bf16.vlgmr.msra.gmra.mrb[40].mxu1 %vm529_vm1, %v1776_v8 }
 0xe08   : > { %3788 = vmatprep.mubr.msk.bf16.mxu1 %vm4168_vm2, %v4167_v7 }
 0xeca   : > { %v1903_v9 = vpop.f32.mrb[28].mxu0 }
 0xecb   : > { %v1918_v27 = vrot.slane %v1903_v9, %v1856_v44  ;;  %v3784_v12 = vpop.f32.mrb[29].mxu0 }
 0xecc   : > { %v1906_v15 = vpop.f32.mrb[30].mxu0 }
 0xecd   : > { %v1919_v19 = vcombine.high %v1918_v27, %v1918_v27  ;;  %v4573_v21 = vpack.c.bf16 %v1918_v27, %v1918_v27  ;;  %v3785_v17 = vpop.f32.mrb[31].mxu0 }
 0xecf   : > { %v4575_v23 = vpack.c.bf16 %v1919_v19, %v1919_v19  ;;  %v1928_v25 = vsel %vm677_vm3, %v4573_v21, 0 }
 0xed0   : > { %3787 = vmatpush3.bf16.xpose.msra.mxu1 %v1928_v25 }
 0xed1   : > { %v1975_v26 = vsel %vm677_vm3, %v4575_v23, 0  ;;  %3798 = vmatprep.subr.bf16.mxu1 %v4167_v7 }
 0xed2   : > { %3793 = vmatpush3.bf16.xpose.msra.mxu0 %v1975_v26 }
 0xed3   : > { %3804 = vmatprep.subr.bf16.mxu0 %v4167_v7 }
 0xeda   : > { %v3776_v28 = vpop.f32.mrb[40].mxu1 }
 0xedb   : > { %v1833_v29 = vpop.f32.mrb[41].mxu1 }
 0xedc   : > { %v3777_v30 = vpop.f32.mrb[42].mxu1 }
 0xedd   : > { %v4583_v31 = vpack.c.bf16 %v3777_v30, %v3776_v28  ;;  %v1836_v32 = vpop.f32.mrb[43].mxu1 }
 0xede   : > { %v4585_v33 = vpack.c.bf16 %v1836_v32, %v1833_v29 }
 0xedf   : > { %3795 = vmatmul.mubr.msk.bf16.vlgmr.msra.gmra.mrb[32].mxu0 %vm677_vm3, %v4583_v31 }
 0xee0   : > { %3789 = vmatmul.mubr.msk.bf16.vlgmr.msra.gmra.mrb[44].mxu1 %vm677_vm3, %v4585_v33  ;;  %3806 = vmatprep.mubr.msk.bf16.mxu0 %vm4168_vm2, %v4167_v7 }
 0xee1   : > { %3800 = vmatprep.mubr.msk.bf16.mxu1 %vm4168_vm2, %v4167_v7 }
 0xfb2   : > { %v2011_v34 = vpop.f32.mrb[32].mxu0 }
 0xfb3   : > { %v1964_v35 = vpop.f32.mrb[44].mxu1  ;;  %v3796_v36 = vpop.f32.mrb[33].mxu0  ;;  %v2025_v46 = vsel %vm2018_vm6, %v2011_v34, -inf }
 0xfb4   : > { %v3790_v37 = vpop.f32.mrb[45].mxu1  ;;  %v2014_v38 = vpop.f32.mrb[34].mxu0  ;;  %v2019_v39 = vsel %vm2018_vm6, %v1964_v35, -inf }
 0xfb5   : > { %v3797_v40 = vpop.f32.mrb[35].mxu0  ;;  %2020 = vmax.xlane.f32.xlu1 %v2019_v39  ;;  %v1967_v41 = vpop.f32.mrb[46].mxu1  ;;  %v2028_v44 = vsel %vm2018_vm6, %v2014_v38, -inf }
 0xfb6   : > { %v3791_v42 = vpop.f32.mrb[47].mxu1  ;;  %v2022_v43 = vsel %vm2018_vm6, %v1967_v41, -inf }
 0xfb7   : > { %2023 = vmax.xlane.f32.xlu0 %v2022_v43 }
 0xfb9   : > { %2029 = vmax.xlane.f32.xlu1 %v2028_v44 }
 0xfbb   : > { %2026 = vmax.xlane.f32.xlu0 %v2025_v46 }
 0xfca   : > { %2117 = vrot.lane.b32.xlu1 %v4575_v23, %s4169_s25 }
 0xfce   : > { %2169 = vrot.lane.b32.xlu1 %v4573_v21, %s4172_s21 }
0x1042   : > { %v2021_v47 = vpop.xlane.xlu1 %2020 }
0x1043   : > { %v2031_v52 = vsub.f32 %v1964_v35, %v2021_v47 }
0x1044   : > { %v2024_v48 = vpop.xlane.xlu0 %2023 }
0x1045   : > { %v2032_v49 = vsub.f32 %v1967_v41, %v2024_v48  ;;  %v2035_v58 = vmul.f32 1.442695, %v2031_v52 }
0x1046   : > { %v2030_v51 = vpop.xlane.xlu1 %2029 }
0x1047   : > { %v2034_v53 = vsub.f32 %v2014_v38, %v2030_v51  ;;  %v2037_v54 = vmul.f32 1.442695, %v2032_v49 }
0x1048   : > { %v2027_v14 = vpop.xlane.xlu0 %2026 }
0x1049   : > { %v2041_v55 = vmul.f32 1.442695, %v2034_v53  ;;  %v2033_v56 = vsub.f32 %v2011_v34, %v2027_v14 }
0x104a   : > { %v2118_v57 = vpop.permute.xlu1 %2117 }
0x104b   : > { %4056 = vpow2.f32 %v2041_v55  ;;  %v2039_v59 = vmul.f32 1.442695, %v2033_v56  ;;  %v2123_v60 = vsel %vm2071_vm7, %v2118_v57, 0 }
0x104c   : > { %4058 = vpow2.f32 %v2037_v54  ;;  %3805 = vmatpush3.bf16.msra.mxu0 %v2123_v60 }
0x104d   : > { %4060 = vpow2.f32 %v2039_v59  ;;  %3816 = vmatprep.subr.bf16.mxu0 %v4167_v7 }
0x104e   : > { %4062 = vpow2.f32 %v2035_v58  ;;  %v2170_v11 = vpop.permute.xlu1 %2169 }
0x104f   : > { %v2175_v32 = vsel %vm677_vm3, %v2170_v11, 0 }
0x1055   : > { %v4057_v61 = vpop.eup %4056 }
0x1056   : > { %v4059_v63 = vpop.eup %4058  ;;  %v2052_v0 = vsel %vm2018_vm6, %v4057_v61, 0.0 }
0x1057   : > { %v4061_v1 = vpop.eup %4060  ;;  %2053 = vadd.xlane.f32.xlu1 %v2052_v0  ;;  %v2046_v3 = vsel %vm2018_vm6, %v4059_v63, 0.0 }
0x1058   : > { %v2049_v2 = vsel %vm2018_vm6, %v4061_v1, 0.0  ;;  %v4063_v24 = vpop.eup %4062 }
0x1059   : > { %2050 = vadd.xlane.f32.xlu0 %v2049_v2  ;;  %v2043_v4 = vsel %vm2018_vm6, %v4063_v24, 0.0 }
0x105b   : > { %2047 = vadd.xlane.f32.xlu1 %v2046_v3 }
0x105d   : > { %2044 = vadd.xlane.f32.xlu0 %v2043_v4 }
0x106c   : > { %2221 = vrot.lane.b32.xlu1 %v4575_v23, %s4172_s21 }
0x1070   : > { %2219 = vrot.lane.b32.xlu1 %v4583_v31, %s4172_s21 }
0x1073   : > { %2066 = vrot.lane.b32.xlu0 %v4573_v21, %s4169_s25 }
0x1077   : > { %2167 = vrot.lane.b32.xlu0 %v4585_v33, %s4172_s21 }
0x10e4   : > { %v2054_v13 = vpop.xlane.xlu1 %2053 }
0x10e5   : > { %4064 = vrcp.f32 %v2054_v13 }
0x10e6   : > { %v2051_v16 = vpop.xlane.xlu0 %2050 }
0x10e7   : > { %4066 = vrcp.f32 %v2051_v16 }
0x10e8   : > { %v2048_v20 = vpop.xlane.xlu1 %2047 }
0x10e9   : > { %4068 = vrcp.f32 %v2048_v20 }
0x10ea   : > { %v2045_v5 = vpop.xlane.xlu0 %2044 }
0x10eb   : > { %4070 = vrcp.f32 %v2045_v5 }
0x10ec   : > { %v2222_v19 = vpop.permute.xlu1 %2221 }
0x10ed   : > { %v2227_v29 = vsel %vm677_vm3, %v2222_v19, 0 }
0x10ee   : > { %v2067_v18 = vpop.permute.xlu0 %2066 }
0x10ef   : > { %v4065_v6 = vpop.eup %4064  ;;  %v2073_v8 = vsel %vm2071_vm7, %v2067_v18, 0 }
0x10f0   : > { %3799 = vmatpush3.bf16.msra.mxu1 %v2073_v8  ;;  %v2062_v27 = vmul.f32 %v4065_v6, %v4057_v61  ;;  %v2220_v34 = vpop.permute.xlu1 %2219 }
0x10f1   : > { %v4067_v9 = vpop.eup %4066  ;;  %3810 = vmatprep.subr.bf16.mxu1 %v4167_v7 }
0x10f2   : > { %v2061_v12 = vmul.f32 %v4067_v9, %v4061_v1  ;;  %v2168_v35 = vpop.permute.xlu0 %2167 }
0x10f3   : > { %v4069_v15 = vpop.eup %4068 }
0x10f4   : > { %v2064_v17 = vpack.c.bf16 %v2062_v27, %v2061_v12  ;;  %v2060_v26 = vmul.f32 %v4069_v15, %v4059_v63 }
0x10f5   : > { %v4071_v25 = vpop.eup %4070 }
0x10f6   : > { %v2059_v28 = vmul.f32 %v4071_v25, %v4063_v24  ;;  %3807 = vmatmul.mubr.msk.bf16.vlgmr.msra.gmra.mrb[36].mxu0 %vm2018_vm6, %v2064_v17 }
0x10f7   : > { %3817 = vmatpush3.bf16.xpose.msra.mxu0 %v2227_v29  ;;  %3818 = vmatprep.mubr.msk.bf16.mxu0 %vm4168_vm2, %v4167_v7 }
0x10f8   : > { %v2063_v30 = vpack.c.bf16 %v2060_v26, %v2059_v28  ;;  %3828 = vmatprep.subr.bf16.mxu0 %v4167_v7 }
0x10fa   : > { %3801 = vmatmul.mubr.msk.bf16.vlgmr.msra.gmra.mrb[48].mxu1 %vm2018_vm6, %v2063_v30 }
0x10fb   : > { %3811 = vmatpush3.bf16.xpose.msra.mxu1 %v2175_v32  ;;  %3812 = vmatprep.mubr.msk.bf16.mxu1 %vm4168_vm2, %v4167_v7 }
0x10fc   : > { %3822 = vmatprep.subr.bf16.mxu1 %v4167_v7 }
0x10fe   : > { %3819 = vmatmul.mubr.msk.bf16.vlgmr.msra.gmra.mrb[40].mxu0 %vm677_vm3, %v2220_v34 }
0x10ff   : > { %3830 = vmatprep.mubr.msk.bf16.mxu0 %vm4168_vm2, %v4167_v7 }
0x1102   : > { %3813 = vmatmul.mubr.msk.bf16.vlgmr.msra.gmra.mrb[52].mxu1 %vm677_vm3, %v2168_v35 }
0x1103   : > { %3824 = vmatprep.mubr.msk.bf16.mxu1 %vm4168_vm2, %v4167_v7 }
0x11c9   : > { %v4635_v36 = vpop.f32.mrb[36].mxu0 }
0x11ca   : > { %v3808_v37 = vpop.f32.mrb[37].mxu0 }
0x11cb   : > { %v4637_v38 = vpop.f32.mrb[38].mxu0 }
0x11cc   : > { %v3809_v39 = vpop.f32.mrb[39].mxu0 }
0x11cd   : > { %v4639_v40 = vpop.f32.mrb[48].mxu1 }
0x11ce   : > { %v3802_v41 = vpop.f32.mrb[49].mxu1 }
0x11cf   : > { %v4641_v42 = vpop.f32.mrb[50].mxu1 }
0x11d0   : > { %v3803_v43 = vpop.f32.mrb[51].mxu1 }
0x11d1   : > { %v2263_v44 = vpop.f32.mrb[40].mxu0 }
0x11d2   : > { %v3820_v46 = vpop.f32.mrb[41].mxu0  ;;  %v2276_v55 = vsel %vm2018_vm6, %v2263_v44, -inf }
0x11d3   : > { %v2266_v47 = vpop.f32.mrb[42].mxu0 }
0x11d4   : > { %v3821_v48 = vpop.f32.mrb[43].mxu0  ;;  %v2279_v56 = vsel %vm2018_vm6, %v2266_v47, -inf }
0x11d5   : > { %v2211_v49 = vpop.f32.mrb[52].mxu1 }
0x11d6   : > { %v3814_v51 = vpop.f32.mrb[53].mxu1  ;;  %v2270_v52 = vsel %vm2018_vm6, %v2211_v49, -inf }
0x11d7   : > { %2271 = vmax.xlane.f32.xlu0 %v2270_v52  ;;  %v2214_v53 = vpop.f32.mrb[54].mxu1 }
0x11d8   : > { %v3815_v54 = vpop.f32.mrb[55].mxu1  ;;  %v2273_v14 = vsel %vm2018_vm6, %v2214_v53, -inf }
0x11d9   : > { %2274 = vmax.xlane.f32.xlu1 %v2273_v14 }
0x11db   : > { %2277 = vmax.xlane.f32.xlu0 %v2276_v55 }
0x11df   : > { %2280 = vmax.xlane.f32.xlu0 %v2279_v56 }
0x11ea   : > { %2365 = vrot.lane.b32.xlu1 %v4575_v23, %s4171_s20 }
0x11ee   : > { %2416 = vrot.lane.b32.xlu1 %v4573_v21, %s4175_s19 }
0x1264   : > { %v2272_v57 = vpop.xlane.xlu0 %2271 }
0x1265   : > { %v2282_v59 = vsub.f32 %v2211_v49, %v2272_v57 }
0x1266   : > { %v2275_v58 = vpop.xlane.xlu1 %2274 }
0x1267   : > { %v2286_v0 = vmul.f32 1.442695, %v2282_v59  ;;  %v2283_v1 = vsub.f32 %v2214_v53, %v2275_v58 }
0x1268   : > { %v2278_v60 = vpop.xlane.xlu0 %2277 }
0x1269   : > { %v2284_v61 = vsub.f32 %v2263_v44, %v2278_v60  ;;  %v2288_v11 = vmul.f32 1.442695, %v2283_v1 }
0x126a   : > { %v2366_v63 = vpop.permute.xlu1 %2365 }
0x126b   : > { %v2290_v2 = vmul.f32 1.442695, %v2284_v61  ;;  %v2371_v24 = vsel %vm2071_vm7, %v2366_v63, 0 }
0x126c   : > { %v2281_v3 = vpop.xlane.xlu0 %2280  ;;  %3829 = vmatpush3.bf16.msra.mxu0 %v2371_v24 }
0x126d   : > { %4072 = vpow2.f32 %v2290_v2  ;;  %v2285_v4 = vsub.f32 %v2266_v47, %v2281_v3  ;;  %3840 = vmatprep.subr.bf16.mxu0 %v4167_v7 }
0x126e   : > { %4074 = vpow2.f32 %v2286_v0  ;;  %v2417_v12 = vpop.permute.xlu1 %2416 }
0x126f   : > { %v2292_v13 = vmul.f32 1.442695, %v2285_v4  ;;  %v2422_v48 = vsel %vm677_vm3, %v2417_v12, 0 }
0x1271   : > { %4076 = vpow2.f32 %v2292_v13 }
0x1272   : > { %4078 = vpow2.f32 %v2288_v11 }
0x1277   : > { %v4073_v16 = vpop.eup %4072 }
0x1278   : > { %v2300_v20 = vsel %vm2018_vm6, %v4073_v16, 0.0  ;;  %v4075_v5 = vpop.eup %4074 }
0x1279   : > { %2301 = vadd.xlane.f32.xlu0 %v2300_v20  ;;  %v2294_v6 = vsel %vm2018_vm6, %v4075_v5, 0.0 }
0x127b   : > { %v4077_v18 = vpop.eup %4076 }
0x127c   : > { %v2303_v8 = vsel %vm2018_vm6, %v4077_v18, 0.0  ;;  %v4079_v9 = vpop.eup %4078 }
0x127d   : > { %2295 = vadd.xlane.f32.xlu0 %v2294_v6  ;;  %2304 = vadd.xlane.f32.xlu1 %v2303_v8  ;;  %v2297_v27 = vsel %vm2018_vm6, %v4079_v9, 0.0 }
0x1281   : > { %2298 = vadd.xlane.f32.xlu1 %v2297_v27 }
0x1292   : > { %2467 = vrot.lane.b32.xlu1 %v4575_v23, %s4175_s19 }
0x1293   : > { %2316 = vrot.lane.b32.xlu0 %v4573_v21, %s4171_s20 }
0x1296   : > { %2465 = vrot.lane.b32.xlu1 %v4583_v31, %s4175_s19 }
0x1297   : > { %2414 = vrot.lane.b32.xlu0 %v4585_v33, %s4175_s19 }
0x1306   : > { %v2302_v15 = vpop.xlane.xlu0 %2301 }
0x1307   : > { %4080 = vrcp.f32 %v2302_v15 }
0x130a   : > { %v2296_v19 = vpop.xlane.xlu0 %2295  ;;  %v2305_v17 = vpop.xlane.xlu1 %2304 }
0x130b   : > { %4082 = vrcp.f32 %v2305_v17 }
0x130c   : > { %4084 = vrcp.f32 %v2296_v19 }
0x130e   : > { %v2317_v25 = vpop.permute.xlu0 %2316  ;;  %v2299_v26 = vpop.xlane.xlu1 %2298 }
0x130f   : > { %v2322_v28 = vsel %vm2071_vm7, %v2317_v25, 0  ;;  %4086 = vrcp.f32 %v2299_v26 }
0x1310   : > { %3823 = vmatpush3.bf16.msra.mxu1 %v2322_v28 }
0x1311   : > { %3834 = vmatprep.subr.bf16.mxu1 %v4167_v7  ;;  %v4081_v29 = vpop.eup %4080 }
0x1312   : > { %v2312_v34 = vmul.f32 %v4081_v29, %v4073_v16  ;;  %v2468_v37 = vpop.permute.xlu1 %2467  ;;  %v2415_v51 = vpop.permute.xlu0 %2414 }
0x1313   : > { %v2473_v46 = vsel %vm677_vm3, %v2468_v37, 0 }
0x1315   : > { %v4083_v30 = vpop.eup %4082 }
0x1316   : > { %v4085_v32 = vpop.eup %4084  ;;  %v2313_v35 = vmul.f32 %v4083_v30, %v4077_v18  ;;  %v2466_v49 = vpop.permute.xlu1 %2465 }
0x1317   : > { %v2310_v43 = vmul.f32 %v4085_v32, %v4075_v5 }
0x1318   : > { %v2315_v41 = vpack.c.bf16 %v2313_v35, %v2312_v34 }
0x1319   : > { %v4087_v39 = vpop.eup %4086 }
0x131a   : > { %v2311_v44 = vmul.f32 %v4087_v39, %v4079_v9  ;;  %3831 = vmatmul.mubr.msk.bf16.vlgmr.msra.gmra.mrb[44].mxu0 %vm2018_vm6, %v2315_v41 }
0x131b   : > { %3841 = vmatpush3.bf16.xpose.msra.mxu0 %v2473_v46  ;;  %3842 = vmatprep.mubr.msk.bf16.mxu0 %vm4168_vm2, %v4167_v7 }
0x131c   : > { %v2314_v47 = vpack.c.bf16 %v2311_v44, %v2310_v43  ;;  %3852 = vmatprep.subr.bf16.mxu0 %v4167_v7 }
0x131e   : > { %3825 = vmatmul.mubr.msk.bf16.vlgmr.msra.gmra.mrb[56].mxu1 %vm2018_vm6, %v2314_v47 }
0x131f   : > { %3835 = vmatpush3.bf16.xpose.msra.mxu1 %v2422_v48  ;;  %3836 = vmatprep.mubr.msk.bf16.mxu1 %vm4168_vm2, %v4167_v7 }
0x1320   : > { %3846 = vmatprep.subr.bf16.mxu1 %v4167_v7 }
0x1322   : > { %3843 = vmatmul.mubr.msk.bf16.vlgmr.msra.gmra.mrb[48].mxu0 %vm677_vm3, %v2466_v49 }
0x1323   : > { %3854 = vmatprep.mubr.msk.bf16.mxu0 %vm4168_vm2, %v4167_v7 }
0x1326   : > { %3837 = vmatmul.mubr.msk.bf16.vlgmr.msra.gmra.mrb[60].mxu1 %vm677_vm3, %v2415_v51 }
0x1327   : > { %3848 = vmatprep.mubr.msk.bf16.mxu1 %vm4168_vm2, %v4167_v7 }
0x13ed   : > { %v4683_v52 = vpop.f32.mrb[44].mxu0 }
0x13ee   : > { %v3832_v53 = vpop.f32.mrb[45].mxu0 }
0x13ef   : > { %v4685_v54 = vpop.f32.mrb[46].mxu0 }
0x13f0   : > { %v3833_v14 = vpop.f32.mrb[47].mxu0 }
0x13f1   : > { %v4687_v55 = vpop.f32.mrb[56].mxu1 }
0x13f2   : > { %v3826_v56 = vpop.f32.mrb[57].mxu1 }
0x13f3   : > { %v4689_v57 = vpop.f32.mrb[58].mxu1 }
0x13f4   : > { %v3827_v58 = vpop.f32.mrb[59].mxu1 }
0x13f5   : > { %v2509_v59 = vpop.f32.mrb[48].mxu0 }
0x13f6   : > { %v3844_v60 = vpop.f32.mrb[49].mxu0  ;;  %v2522_v11 = vsel %vm2018_vm6, %v2509_v59, -inf }
0x13f7   : > { %v2512_v61 = vpop.f32.mrb[50].mxu0 }
0x13f8   : > { %v3845_v63 = vpop.f32.mrb[51].mxu0  ;;  %v2525_v13 = vsel %vm2018_vm6, %v2512_v61, -inf }
0x13f9   : > { %v2458_v0 = vpop.f32.mrb[60].mxu1 }
0x13fa   : > { %v3838_v1 = vpop.f32.mrb[61].mxu1  ;;  %v2516_v2 = vsel %vm2018_vm6, %v2458_v0, -inf }
0x13fb   : > { %2517 = vmax.xlane.f32.xlu0 %v2516_v2  ;;  %v2461_v24 = vpop.f32.mrb[62].mxu1 }
0x13fc   : > { %v3839_v3 = vpop.f32.mrb[63].mxu1  ;;  %v2519_v4 = vsel %vm2018_vm6, %v2461_v24, -inf }
0x13fd   : > { %2520 = vmax.xlane.f32.xlu1 %v2519_v4 }
0x13ff   : > { %2523 = vmax.xlane.f32.xlu0 %v2522_v11 }
0x1403   : > { %2526 = vmax.xlane.f32.xlu0 %v2525_v13 }
0x140e   : > { %2611 = vrot.lane.b32.xlu1 %v4575_v23, %s4174_s26 }
0x1412   : > { %2662 = vrot.lane.b32.xlu1 %v4573_v21, %s4178_s29 }
0x1488   : > { %v2518_v16 = vpop.xlane.xlu0 %2517 }
0x1489   : > { %v2528_v5 = vsub.f32 %v2458_v0, %v2518_v16 }
0x148a   : > { %v2521_v20 = vpop.xlane.xlu1 %2520 }
0x148b   : > { %v2532_v9 = vmul.f32 1.442695, %v2528_v5  ;;  %v2529_v27 = vsub.f32 %v2461_v24, %v2521_v20 }
0x148c   : > { %v2524_v18 = vpop.xlane.xlu0 %2523 }
0x148d   : > { %v2530_v6 = vsub.f32 %v2509_v59, %v2524_v18  ;;  %v2534_v25 = vmul.f32 1.442695, %v2529_v27 }
0x148e   : > { %v2612_v8 = vpop.permute.xlu1 %2611 }
0x148f   : > { %v2536_v12 = vmul.f32 1.442695, %v2530_v6  ;;  %v2617_v15 = vsel %vm2071_vm7, %v2612_v8, 0 }
0x1490   : > { %v2527_v19 = vpop.xlane.xlu0 %2526  ;;  %3853 = vmatpush3.bf16.msra.mxu0 %v2617_v15 }
0x1491   : > { %4088 = vpow2.f32 %v2536_v12  ;;  %v2531_v17 = vsub.f32 %v2512_v61, %v2527_v19  ;;  %3864 = vmatprep.subr.bf16.mxu0 %v4167_v7 }
0x1492   : > { %4090 = vpow2.f32 %v2532_v9  ;;  %v2663_v41 = vpop.permute.xlu1 %2662 }
0x1493   : > { %v2538_v26 = vmul.f32 1.442695, %v2531_v17  ;;  %v2668_v1 = vsel %vm677_vm3, %v2663_v41, 0 }
0x1495   : > { %4092 = vpow2.f32 %v2538_v26 }
0x1496   : > { %4094 = vpow2.f32 %v2534_v25 }
0x149b   : > { %v4089_v28 = vpop.eup %4088 }
0x149c   : > { %v2546_v29 = vsel %vm2018_vm6, %v4089_v28, 0.0  ;;  %v4091_v30 = vpop.eup %4090 }
0x149d   : > { %2547 = vadd.xlane.f32.xlu0 %v2546_v29  ;;  %v2540_v34 = vsel %vm2018_vm6, %v4091_v30, 0.0 }
0x149f   : > { %v4093_v32 = vpop.eup %4092 }
0x14a0   : > { %v2549_v35 = vsel %vm2018_vm6, %v4093_v32, 0.0  ;;  %v4095_v37 = vpop.eup %4094 }
0x14a1   : > { %2541 = vadd.xlane.f32.xlu0 %v2540_v34  ;;  %2550 = vadd.xlane.f32.xlu1 %v2549_v35  ;;  %v2543_v39 = vsel %vm2018_vm6, %v4095_v37, 0.0 }
0x14a5   : > { %2544 = vadd.xlane.f32.xlu1 %v2543_v39 }
0x14b6   : > { %2713 = vrot.lane.b32.xlu1 %v4575_v23, %s4178_s29 }
0x14b7   : > { %2562 = vrot.lane.b32.xlu0 %v4573_v21, %s4174_s26 }
0x14ba   : > { %2711 = vrot.lane.b32.xlu1 %v4583_v31, %s4178_s29 }
0x14bb   : > { %2660 = vrot.lane.b32.xlu0 %v4585_v33, %s4178_s29 }
0x152a   : > { %v2548_v43 = vpop.xlane.xlu0 %2547 }
0x152b   : > { %4096 = vrcp.f32 %v2548_v43 }
0x152e   : > { %v2542_v44 = vpop.xlane.xlu0 %2541  ;;  %v2551_v46 = vpop.xlane.xlu1 %2550 }
0x152f   : > { %4098 = vrcp.f32 %v2551_v46 }
0x1530   : > { %4100 = vrcp.f32 %v2542_v44 }
0x1532   : > { %v2563_v47 = vpop.permute.xlu0 %2562  ;;  %v2545_v48 = vpop.xlane.xlu1 %2544 }
0x1533   : > { %v2568_v49 = vsel %vm2071_vm7, %v2563_v47, 0  ;;  %4102 = vrcp.f32 %v2545_v48 }
0x1534   : > { %3847 = vmatpush3.bf16.msra.mxu1 %v2568_v49 }
0x1535   : > { %3858 = vmatprep.subr.bf16.mxu1 %v4167_v7  ;;  %v4097_v51 = vpop.eup %4096 }
0x1536   : > { %v2558_v14 = vmul.f32 %v4097_v51, %v4089_v28  ;;  %v2714_v56 = vpop.permute.xlu1 %2713  ;;  %v2661_v24 = vpop.permute.xlu0 %2660 }
0x1537   : > { %v2719_v63 = vsel %vm677_vm3, %v2714_v56, 0 }
0x1539   : > { %v4099_v31 = vpop.eup %4098 }
0x153a   : > { %v4101_v53 = vpop.eup %4100  ;;  %v2559_v33 = vmul.f32 %v4099_v31, %v4093_v32  ;;  %v2712_v2 = vpop.permute.xlu1 %2711 }
0x153b   : > { %v2556_v60 = vmul.f32 %v4101_v53, %v4091_v30 }
0x153c   : > { %v2561_v59 = vpack.c.bf16 %v2559_v33, %v2558_v14 }
0x153d   : > { %v4103_v58 = vpop.eup %4102 }
0x153e   : > { %v2557_v61 = vmul.f32 %v4103_v58, %v4095_v37  ;;  %3855 = vmatmul.mubr.msk.bf16.vlgmr.msra.gmra.mrb[52].mxu0 %vm2018_vm6, %v2561_v59 }
0x153f   : > { %3865 = vmatpush3.bf16.xpose.msra.mxu0 %v2719_v63  ;;  %3866 = vmatprep.mubr.msk.bf16.mxu0 %vm4168_vm2, %v4167_v7 }
0x1540   : > { %v2560_v0 = vpack.c.bf16 %v2557_v61, %v2556_v60  ;;  %3876 = vmatprep.subr.bf16.mxu0 %v4167_v7 }
0x1542   : > { %3849 = vmatmul.mubr.msk.bf16.vlgmr.msra.gmra.mrb[64].mxu1 %vm2018_vm6, %v2560_v0 }
0x1543   : > { %3859 = vmatpush3.bf16.xpose.msra.mxu1 %v2668_v1  ;;  %3860 = vmatprep.mubr.msk.bf16.mxu1 %vm4168_vm2, %v4167_v7 }
0x1544   : > { %3870 = vmatprep.subr.bf16.mxu1 %v4167_v7 }
0x1546   : > { %3867 = vmatmul.mubr.msk.bf16.vlgmr.msra.gmra.mrb[56].mxu0 %vm677_vm3, %v2712_v2 }
0x1547   : > { %3878 = vmatprep.mubr.msk.bf16.mxu0 %vm4168_vm2, %v4167_v7 }
0x154a   : > { %3861 = vmatmul.mubr.msk.bf16.vlgmr.msra.gmra.mrb[68].mxu1 %vm677_vm3, %v2661_v24 }
0x154b   : > { %3872 = vmatprep.mubr.msk.bf16.mxu1 %vm4168_vm2, %v4167_v7 }
0x1611   : > { %v2653_v3 = vpop.f32.mrb[52].mxu0 }
0x1612   : > { %v3856_v4 = vpop.f32.mrb[53].mxu0 }
0x1613   : > { %v2656_v11 = vpop.f32.mrb[54].mxu0 }
0x1614   : > { %v3857_v13 = vpop.f32.mrb[55].mxu0 }
0x1615   : > { %v2604_v16 = vpop.f32.mrb[64].mxu1 }
0x1616   : > { %v3850_v20 = vpop.f32.mrb[65].mxu1 }
0x1617   : > { %v2607_v5 = vpop.f32.mrb[66].mxu1 }
0x1618   : > { %v3851_v18 = vpop.f32.mrb[67].mxu1 }
0x1619   : > { %v2755_v6 = vpop.f32.mrb[56].mxu0 }
0x161a   : > { %v3868_v8 = vpop.f32.mrb[57].mxu0  ;;  %v2768_v26 = vsel %vm2018_vm6, %v2755_v6, -inf }
0x161b   : > { %v2758_v9 = vpop.f32.mrb[58].mxu0 }
0x161c   : > { %v3869_v27 = vpop.f32.mrb[59].mxu0  ;;  %v2771_v28 = vsel %vm2018_vm6, %v2758_v9, -inf }
0x161d   : > { %v2704_v12 = vpop.f32.mrb[68].mxu1 }
0x161e   : > { %v3862_v15 = vpop.f32.mrb[69].mxu1  ;;  %v2762_v19 = vsel %vm2018_vm6, %v2704_v12, -inf }
0x161f   : > { %2763 = vmax.xlane.f32.xlu0 %v2762_v19  ;;  %v2707_v17 = vpop.f32.mrb[70].mxu1 }
0x1620   : > { %v3863_v25 = vpop.f32.mrb[71].mxu1  ;;  %v2765_v7 = vsel %vm2018_vm6, %v2707_v17, -inf }
0x1621   : > { %2766 = vmax.xlane.f32.xlu1 %v2765_v7 }
0x1623   : > { %2769 = vmax.xlane.f32.xlu0 %v2768_v26 }
0x1627   : > { %2772 = vmax.xlane.f32.xlu0 %v2771_v28 }
0x16ac   : > { %v2764_v29 = vpop.xlane.xlu0 %2763 }
0x16ad   : > { %v2774_v30 = vsub.f32 %v2704_v12, %v2764_v29 }
0x16ae   : > { %v2767_v32 = vpop.xlane.xlu1 %2766 }
0x16af   : > { %v2778_v37 = vmul.f32 1.442695, %v2774_v30  ;;  %v2775_v39 = vsub.f32 %v2707_v17, %v2767_v32 }
0x16b0   : > { %v2770_v34 = vpop.xlane.xlu0 %2769 }
0x16b1   : > { %v2776_v35 = vsub.f32 %v2755_v6, %v2770_v34  ;;  %v2780_v46 = vmul.f32 1.442695, %v2775_v39 }
0x16b3   : > { %v2782_v41 = vmul.f32 1.442695, %v2776_v35 }
0x16b4   : > { %v2773_v43 = vpop.xlane.xlu0 %2772 }
0x16b5   : > { %4104 = vpow2.f32 %v2782_v41  ;;  %v2777_v44 = vsub.f32 %v2758_v9, %v2773_v43 }
0x16b6   : > { %4106 = vpow2.f32 %v2778_v37 }
0x16b7   : > { %v2784_v47 = vmul.f32 1.442695, %v2777_v44 }
0x16b9   : > { %4108 = vpow2.f32 %v2784_v47 }
0x16ba   : > { %4110 = vpow2.f32 %v2780_v46 }
0x16bf   : > { %v4105_v48 = vpop.eup %4104 }
0x16c0   : > { %v2792_v49 = vsel %vm2018_vm6, %v4105_v48, 0.0  ;;  %v4107_v51 = vpop.eup %4106 }
0x16c1   : > { %2793 = vadd.xlane.f32.xlu0 %v2792_v49  ;;  %v2786_v53 = vsel %vm2018_vm6, %v4107_v51, 0.0 }
0x16c3   : > { %v4109_v31 = vpop.eup %4108 }
0x16c4   : > { %v2795_v14 = vsel %vm2018_vm6, %v4109_v31, 0.0  ;;  %v4111_v33 = vpop.eup %4110 }
0x16c5   : > { %2787 = vadd.xlane.f32.xlu0 %v2786_v53  ;;  %2796 = vadd.xlane.f32.xlu1 %v2795_v14  ;;  %v2789_v56 = vsel %vm2018_vm6, %v4111_v33, 0.0 }
0x16c9   : > { %2790 = vadd.xlane.f32.xlu1 %v2789_v56 }
0x16da   : > { %2857 = vrot.lane.b32.xlu1 %v4575_v23, %s4177_s16 }
0x16db   : > { %2808 = vrot.lane.b32.xlu0 %v4573_v21, %s4177_s16 }
0x16de   : > { %2910 = vrot.lane.b32.xlu1 %v4687_v55, %s4180_s30 }
0x16df   : > { %2914 = vrot.lane.b32.xlu0 %v4683_v52, %s4180_s30 }
0x16e2   : > { %2912 = vrot.lane.b32.xlu1 %v4689_v57, %s4180_s30 }
0x16e3   : > { %2926 = vrot.lane.b32.xlu0 %v2604_v16, %s4181_s12 }
0x16e6   : > { %2916 = vrot.lane.b32.xlu1 %v4685_v54, %s4180_s30 }
0x16e7   : > { %2930 = vrot.lane.b32.xlu0 %v2653_v3, %s4181_s12 }
0x16ea   : > { %2928 = vrot.lane.b32.xlu1 %v2607_v5, %s4181_s12 }
0x16ee   : > { %2932 = vrot.lane.b32.xlu1 %v2656_v11, %s4181_s12 }
0x174e   : > { %v2794_v21 = vpop.xlane.xlu0 %2793 }
0x174f   : > { %4112 = vrcp.f32 %v2794_v21 }
0x1752   : > { %v2788_v23 = vpop.xlane.xlu0 %2787  ;;  %v2797_v55 = vpop.xlane.xlu1 %2796 }
0x1753   : > { %4114 = vrcp.f32 %v2797_v55 }
0x1754   : > { %4116 = vrcp.f32 %v2788_v23 }
0x1756   : > { %v2809_v52 = vpop.permute.xlu0 %2808  ;;  %v2791_v58 = vpop.xlane.xlu1 %2790 }
0x1757   : > { %v2814_v57 = vsel %vm2071_vm7, %v2809_v52, 0  ;;  %4118 = vrcp.f32 %v2791_v58 }
0x1758   : > { %3871 = vmatpush3.bf16.msra.mxu1 %v2814_v57 }
0x1759   : > { %v4113_v60 = vpop.eup %4112 }
0x175a   : > { %v2858_v59 = vpop.permute.xlu1 %2857  ;;  %v2804_v0 = vmul.f32 %v4113_v60, %v4105_v48  ;;  %v2915_v15 = vpop.permute.xlu0 %2914 }
0x175b   : > { %v2863_v54 = vsel %vm2071_vm7, %v2858_v59, 0  ;;  %v2956_v41 = vsel %vm677_vm3, %v4635_v36, %v2915_v15  ;;  %v3024_v15 = vsub.s32 4, %v4321_v45 }
0x175c   : > { %3877 = vmatpush3.bf16.msra.mxu0 %v2863_v54 }
0x175d   : > { %v4115_v61 = vpop.eup %4114 }
0x175e   : > { %v4117_v63 = vpop.eup %4116  ;;  %v2805_v1 = vmul.f32 %v4115_v61, %v4109_v31  ;;  %v2911_v27 = vpop.permute.xlu1 %2910 }
0x175f   : > { %v2802_v3 = vmul.f32 %v4117_v63, %v4107_v51  ;;  %v2927_v17 = vpop.permute.xlu0 %2926  ;;  %v2954_v26 = vsel %vm677_vm3, %v4639_v40, %v2911_v27 }
0x1760   : > { %v2807_v24 = vpack.c.bf16 %v2805_v1, %v2804_v0  ;;  %v2958_v29 = vsel %vm775_vm4, %v2954_v26, %v2927_v17  ;;  %v4811_v17 = vld [vmem:[%s4271_s22] sm:$0x7f] }
0x1761   : > { %v4119_v2 = vpop.eup %4118 }
0x1762   : > { %v2803_v4 = vmul.f32 %v4119_v2, %v4111_v33  ;;  %3879 = vmatmul.mubr.msk.bf16.vlgmr.msra.gmra.mrb[60].mxu0 %vm2018_vm6, %v2807_v24  ;;  %v2913_v12 = vpop.permute.xlu1 %2912 }
0x1763   : > { %v2931_v7 = vpop.permute.xlu0 %2930  ;;  %v2955_v32 = vsel %vm677_vm3, %v4641_v42, %v2913_v12 }
0x1764   : > { %v2806_v11 = vpack.c.bf16 %v2803_v4, %v2802_v3  ;;  %v2960_v43 = vsel %vm775_vm4, %v2956_v41, %v2931_v7  ;;  %v3966_v3 = vld [vmem:[%s4286_s11] sm:$0xff]   ;;  %v3967_v4 = vld [vmem:[%s4286_s11 + $0x8] sm:$0xff]   ;;  %v3032_v7 = vsub.s32 5, %v4321_v45 }
0x1765   : > { %3882 = vmatprep.subr.bf16.mxu1 %v3966_v3 }
0x1766   : > { %3873 = vmatmul.mubr.msk.bf16.vlgmr.msra.gmra.mrb[72].mxu1 %vm2018_vm6, %v2806_v11  ;;  %v2917_v19 = vpop.permute.xlu1 %2916 }
0x1767   : > { %v2957_v47 = vsel %vm677_vm3, %v4637_v38, %v2917_v19  ;;  %3883 = vmatpush3.bf16.msra.mxu1 %v3966_v3 }
0x1768   : > { %3884 = vmatprep.subr.bf16.mxu1 %v3967_v4 }
0x176a   : > { %v2929_v25 = vpop.permute.xlu1 %2928 }
0x176b   : > { %v2959_v35 = vsel %vm775_vm4, %v2955_v32, %v2929_v25  ;;  %3885 = vmatpush3.bf16.msra.mxu1 %v3967_v4  ;;  %v3025_v25 = vrot.slane %v4811_v17, %v3024_v15 }
0x176e   : > { %v2933_v28 = vpop.permute.xlu1 %2932 }
0x176f   : > { %v2961_v48 = vsel %vm775_vm4, %v2957_v47, %v2933_v28 }
0x1835   : > { %v2899_v13 = vpop.f32.mrb[60].mxu0 }
0x1836   : > { %v3880_v16 = vpop.f32.mrb[61].mxu0 }
0x1837   : > { %v2902_v20 = vpop.f32.mrb[62].mxu0 }
0x1838   : > { %v3881_v5 = vpop.f32.mrb[63].mxu0 }
0x1839   : > { %v2850_v18 = vpop.f32.mrb[72].mxu1 }
0x183a   : > { %2942 = vrot.lane.b32.xlu0 %v2850_v18, %s4182_s24  ;;  %v3874_v6 = vpop.f32.mrb[73].mxu1 }
0x183b   : > { %v2853_v8 = vpop.f32.mrb[74].mxu1 }
0x183c   : > { %2944 = vrot.lane.b32.xlu1 %v2853_v8, %s4182_s24  ;;  %v3875_v9 = vpop.f32.mrb[75].mxu1 }
0x183e   : > { %2946 = vrot.lane.b32.xlu0 %v2899_v13, %s4182_s24 }
0x1840   : > { %2948 = vrot.lane.b32.xlu1 %v2902_v20, %s4182_s24 }
0x18ac   : > { %v2943_v30 = vpop.permute.xlu0 %2942 }
0x18ad   : > { %v2962_v34 = vsel %vm1698_vm5, %v2958_v29, %v2943_v30 }
0x18ae   : > { %v4771_v37 = vadd.f32 %v2962_v34, %v4516_v50  ;;  %v2945_v39 = vpop.permute.xlu1 %2944  ;;  %v3033_v34 = vrot.slane %v4811_v17, %v3032_v7 }
0x18af   : > { %v2963_v40 = vsel %vm1698_vm5, %v2959_v35, %v2945_v39 }
0x18b0   : > { %v4778_v44 = vadd.f32 %v2963_v40, %v4519_v10  ;;  %v2947_v46 = vpop.permute.xlu0 %2946  ;;  %v2970_v42 = vsel %vm529_vm1, %v4771_v37, 0.0 }
0x18b1   : > { %v2964_v50 = vsel %vm1698_vm5, %v2960_v43, %v2947_v46  ;;  %2971 = vadd.xlane.f32.xlu0 %v2970_v42 }
0x18b2   : > { %v4787_v36 = vadd.f32 %v2964_v50, %v4532_v62  ;;  %v2949_v49 = vpop.permute.xlu1 %2948  ;;  %v2973_v10 = vsel %vm529_vm1, %v4778_v44, 0.0 }
0x18b3   : > { %v2965_v51 = vsel %vm1698_vm5, %v2961_v48, %v2949_v49  ;;  %2974 = vadd.xlane.f32.xlu1 %v2973_v10 }
0x18b4   : > { %v4793_v31 = vadd.f32 %v2965_v51, %v4535_v22  ;;  %v2976_v38 = vsel %vm529_vm1, %v4787_v36, 0.0 }
0x18b5   : > { %2977 = vadd.xlane.f32.xlu0 %v2976_v38  ;;  %v3968_v38 = vld [vmem:[%s4296_s23] sm:$0xff]  }
0x18b6   : > { %v2979_v53 = vsel %vm529_vm1, %v4793_v31, 0.0  ;;  %3890 = vmatprep.subr.bf16.mxu0 %v3968_v38 }
0x18b7   : > { %3891 = vmatpush3.bf16.msra.mxu0 %v3968_v38 }
0x18b9   : > { %2980 = vadd.xlane.f32.xlu0 %v2979_v53  ;;  %v3969_v53 = vld [vmem:[%s4296_s23 + $0x8] sm:$0xff]  }
0x18ba   : > { %3892 = vmatprep.subr.bf16.mxu0 %v3969_v53 }
0x18bb   : > { %3893 = vmatpush3.bf16.msra.mxu0 %v3969_v53 }
0x193e   : > { %v2972_v62 = vpop.xlane.xlu0 %2971 }
0x193f   : > { %v2982_v14 = vmul.f32 0.03125, %v2972_v62  ;;  %v3970_v62 = vld [vmem:[%s4296_s23 + $0x10] sm:$0xff]  }
0x1940   : > { %v2975_v33 = vpop.xlane.xlu1 %2974  ;;  %3894 = vmatprep.subr.bf16.mxu0 %v3970_v62 }
0x1941   : > { %v2986_v56 = vsub.f32 %v4771_v37, %v2982_v14  ;;  %v2983_v21 = vmul.f32 0.03125, %v2975_v33  ;;  %3895 = vmatpush3.bf16.msra.mxu0 %v3970_v62  ;;  %v3971_v14 = vld [vmem:[%s4296_s23 + $0x18] sm:$0xff]   ;;  %v3972_v33 = vld [vmem:[%s4296_s23 + $0x20] sm:$0xff]  }
0x1942   : > { %v2978_v23 = vpop.xlane.xlu0 %2977  ;;  %3896 = vmatprep.subr.bf16.mxu0 %v3971_v14 }
0x1943   : > { %v2987_v55 = vsub.f32 %v4778_v44, %v2983_v21  ;;  %v2984_v52 = vmul.f32 0.03125, %v2978_v23  ;;  %v2990_v22 = vmul.f32 %v2986_v56, %v2986_v56  ;;  %v3974_v21 = vld [vmem:[%s4296_s23 + $0x30] sm:$0xff]   ;;  %v3975_v23 = vld [vmem:[%s4296_s23 + $0x38] sm:$0xff]  }
0x1945   : > { %v2988_v58 = vsub.f32 %v4787_v36, %v2984_v52  ;;  %v2994_v57 = vsel %vm529_vm1, %v2990_v22, 0.0  ;;  %v2991_v59 = vmul.f32 %v2987_v55, %v2987_v55  ;;  %3897 = vmatpush3.bf16.msra.mxu0 %v3971_v14 }
0x1946   : > { %2995 = vadd.xlane.f32.xlu0 %v2994_v57  ;;  %v2981_v54 = vpop.xlane.xlu0 %2980  ;;  %3898 = vmatprep.subr.bf16.mxu0 %v3972_v33 }
0x1947   : > { %v2985_v60 = vmul.f32 0.03125, %v2981_v54  ;;  %v2997_v61 = vsel %vm529_vm1, %v2991_v59, 0.0  ;;  %v2992_v63 = vmul.f32 %v2988_v58, %v2988_v58 }
0x1948   : > { %2998 = vadd.xlane.f32.xlu1 %v2997_v61 }
0x1949   : > { %v2989_v0 = vsub.f32 %v4793_v31, %v2985_v60  ;;  %v3000_v1 = vsel %vm529_vm1, %v2992_v63, 0.0  ;;  %3899 = vmatpush3.bf16.msra.mxu0 %v3972_v33 }
0x194a   : > { %3001 = vadd.xlane.f32.xlu0 %v3000_v1 }
0x194b   : > { %v2993_v2 = vmul.f32 %v2989_v0, %v2989_v0 }
0x194d   : > { %v3003_v24 = vsel %vm529_vm1, %v2993_v2, 0.0 }
0x194e   : > { %3004 = vadd.xlane.f32.xlu1 %v3003_v24 }
0x19d3   : > { %v2996_v11 = vpop.xlane.xlu0 %2995 }
0x19d4   : > { %v3006_v13 = vmul.f32 0.03125, %v2996_v11 }
0x19d5   : > { %v2999_v16 = vpop.xlane.xlu1 %2998 }
0x19d6   : > { %v3010_v20 = vadd.f32 1e-05, %v3006_v13  ;;  %v3007_v5 = vmul.f32 0.03125, %v2999_v16 }
0x19d7   : > { %v3002_v18 = vpop.xlane.xlu0 %3001 }
0x19d8   : > { %4120 = vrsqrt.f32 %v3010_v20  ;;  %v3011_v6 = vadd.f32 1e-05, %v3007_v5  ;;  %v3008_v8 = vmul.f32 0.03125, %v3002_v18 }
0x19da   : > { %4122 = vrsqrt.f32 %v3011_v6  ;;  %v3012_v9 = vadd.f32 1e-05, %v3008_v8 }
0x19db   : > { %v3005_v27 = vpop.xlane.xlu1 %3004 }
0x19dc   : > { %4124 = vrsqrt.f32 %v3012_v9  ;;  %v3009_v12 = vmul.f32 0.03125, %v3005_v27 }
0x19de   : > { %v3013_v19 = vadd.f32 1e-05, %v3009_v12 }
0x19e0   : > { %4126 = vrsqrt.f32 %v3013_v19 }
0x19e2   : > { %v4121_v26 = vpop.eup %4120 }
0x19e3   : > { %v3018_v28 = vmul.f32 %v4121_v26, %v2986_v56  ;;  %v3973_v56 = vld [vmem:[%s4296_s23 + $0x28] sm:$0xff]  }
0x19e4   : > { %v4123_v29 = vpop.eup %4122  ;;  %3900 = vmatprep.subr.bf16.mxu0 %v3973_v56 }
0x19e5   : > { %v3019_v30 = vmul.f32 %v4123_v29, %v2987_v55  ;;  %v3026_v32 = vmul.f32 %v3025_v25, %v3018_v28  ;;  %3901 = vmatpush3.bf16.msra.mxu0 %v3973_v56  ;;  %v3552_v55 = vld [vmem:[%s4877_s18] ss:$0 sm:$0xff] }
0x19e6   : > { %v4125_v35 = vpop.eup %4124  ;;  %3902 = vmatprep.subr.bf16.mxu0 %v3974_v21 }
0x19e7   : > { %v3020_v39 = vmul.f32 %v4125_v35, %v2988_v58  ;;  %v3027_v41 = vmul.f32 %v3025_v25, %v3019_v30  ;;  %v3034_v40 = vadd.f32 %v3033_v34, %v3026_v32 }
0x19e9   : > { %v3035_v43 = vadd.f32 %v3033_v34, %v3027_v41  ;;  %v3028_v42 = vmul.f32 %v3025_v25, %v3020_v39  ;;  %3903 = vmatpush3.bf16.msra.mxu0 %v3974_v21 }
0x19ea   : > { %v4127_v46 = vpop.eup %4126  ;;  %3904 = vmatprep.subr.bf16.mxu0 %v3975_v23 }
0x19eb   : > { %v3021_v47 = vmul.f32 %v4127_v46, %v2989_v0  ;;  %v3038_v50 = vpack.c.bf16 %v3035_v43, %v3034_v40  ;;  %v3036_v49 = vadd.f32 %v3033_v34, %v3028_v42 }
0x19ed   : > { %v3029_v48 = vmul.f32 %v3025_v25, %v3021_v47  ;;  %3886 = vmatprep.mubr.msk.bf16.mxu1 %vm529_vm1, %v3038_v50  ;;  %3905 = vmatpush3.bf16.msra.mxu0 %v3975_v23 }
0x19ef   : > { %v3037_v10 = vadd.f32 %v3033_v34, %v3029_v48 }
0x19f1   : > { %v3039_v51 = vpack.c.bf16 %v3037_v10, %v3036_v49  ;;  %v3275_v49 = vsub.s32 6, %v4321_v45 }
0x19f3   : > { %3887 = vmatmul.mubr.msk.bf16.vlgmr.msra.gmra.mrb[76].mxu1 %vm529_vm1, %v3039_v51  ;;  %v3276_v10 = vrot.slane %v4811_v17, %v3275_v49  ;;  %v4186_v17 = vmov (!%p3565_p6), 0  }
0x19f4   : > { %4142 = vset.pattern.permute.xlu0 (!%p3565_p6), %v4186_v17 }
0x1ac6   : > { %v3888_v52 = vpop.f32.mrb[76].mxu1 }
0x1ac7   : > { %v3112_v22 = vadd.f32 %v3888_v52, %v3552_v55  ;;  %v3103_v58 = vpop.f32.mrb[77].mxu1 }
0x1ac8   : > { %v3104_v57 = vadd.f32 %v3552_v55, %v3103_v58  ;;  %v3889_v59 = vpop.f32.mrb[78].mxu1 }
0x1ac9   : > { %v3124_v54 = vmul.f32 0.044715, %v3112_v22  ;;  %v3115_v60 = vadd.f32 %v3889_v59, %v3552_v55  ;;  %v3106_v61 = vpop.f32.mrb[79].mxu1  ;;  %v3120_v32 = vmul.f32 0.5, %v3112_v22 }
0x1aca   : > { %v3122_v63 = vmul.f32 0.044715, %v3104_v57  ;;  %v3107_v0 = vadd.f32 %v3552_v55, %v3106_v61  ;;  %v3118_v39 = vmul.f32 0.5, %v3104_v57 }
0x1acb   : > { %v3128_v1 = vmul.f32 %v3124_v54, %v3112_v22  ;;  %v3125_v2 = vmul.f32 0.044715, %v3115_v60  ;;  %v3121_v34 = vmul.f32 0.5, %v3115_v60 }
0x1acc   : > { %v3126_v24 = vmul.f32 %v3122_v63, %v3104_v57  ;;  %v3123_v3 = vmul.f32 0.044715, %v3107_v0  ;;  %v3119_v41 = vmul.f32 0.5, %v3107_v0 }
0x1acd   : > { %v3132_v4 = vmul.f32 %v3128_v1, %v3112_v22  ;;  %v3129_v11 = vmul.f32 %v3125_v2, %v3115_v60 }
0x1ace   : > { %v3130_v13 = vmul.f32 %v3126_v24, %v3104_v57  ;;  %v3127_v16 = vmul.f32 %v3123_v3, %v3107_v0 }
0x1acf   : > { %v3136_v20 = vadd.f32 %v3132_v4, %v3112_v22  ;;  %v3133_v5 = vmul.f32 %v3129_v11, %v3115_v60 }
0x1ad0   : > { %v3131_v18 = vmul.f32 %v3127_v16, %v3107_v0  ;;  %v3134_v6 = vadd.f32 %v3130_v13, %v3104_v57  ;;  %v3289_v57 = vld [vmem:[%s4871_s8] sm:$0x3] (!%p3565_p6) }
0x1ad1   : > { %v3140_v8 = vmul.f32 0.7978846, %v3136_v20  ;;  %v3137_v9 = vadd.f32 %v3133_v5, %v3115_v60 }
0x1ad2   : > { %v3135_v27 = vadd.f32 %v3131_v18, %v3107_v0  ;;  %v3138_v12 = vmul.f32 0.7978846, %v3134_v6 }
0x1ad3   : > { %4128 = vtanh.f32 %v3140_v8  ;;  %v3141_v15 = vmul.f32 0.7978846, %v3137_v9 }
0x1ad4   : > { %v3139_v19 = vmul.f32 0.7978846, %v3135_v27  ;;  %4130 = vtanh.f32 %v3138_v12 }
0x1ad5   : > { %4132 = vtanh.f32 %v3141_v15 }
0x1ad6   : > { %4134 = vtanh.f32 %v3139_v19 }
0x1add   : > { %v4129_v25 = vpop.eup %4128 }
0x1ade   : > { %v4131_v7 = vpop.eup %4130  ;;  %v3148_v26 = vadd.f32 1.0, %v4129_v25 }
0x1adf   : > { %v4133_v28 = vpop.eup %4132  ;;  %v3146_v29 = vadd.f32 1.0, %v4131_v7 }
0x1ae0   : > { %v4135_v30 = vpop.eup %4134  ;;  %v3149_v35 = vadd.f32 1.0, %v4133_v28  ;;  %v3152_v43 = vmul.f32 %v3148_v26, %v3120_v32 }
0x1ae1   : > { %v3147_v40 = vadd.f32 1.0, %v4135_v30  ;;  %v3150_v42 = vmul.f32 %v3146_v29, %v3118_v39 }
0x1ae2   : > { %v3153_v46 = vmul.f32 %v3149_v35, %v3121_v34 }
0x1ae3   : > { %v3151_v47 = vmul.f32 %v3147_v40, %v3119_v41 }
0x1ae4   : > { %v3155_v50 = vpack.c.bf16 %v3153_v46, %v3152_v43 }
0x1ae5   : > { %v3154_v48 = vpack.c.bf16 %v3151_v47, %v3150_v42 }
0x1ae7   : > { %3906 = vmatprep.mubr.bf16.mxu0 %v3154_v48 }
0x1ae8   : > { %3907 = vmatmul.mubr.bf16.vlgmr.msra.gmra.mrb[64].mxu0 %v3155_v50 }
0x1bbb   : > { %v3908_v51 = vpop.f32.mrb[64].mxu0 }
0x1bbc   : > { %v3271_v38 = vadd.f32 %v3908_v51, %v4787_v36  ;;  %v3254_v53 = vpop.f32.mrb[65].mxu0  ;;  %v3292_v36 = vld [vmem:[%s4872_s9] sm:$0xf] (!%p3565_p6) }
0x1bbd   : > { %v3269_v62 = vadd.f32 %v3254_v53, %v4771_v37  ;;  %v3909_v14 = vpop.f32.mrb[66].mxu0  ;;  %3288 = sbr.rel (%p3565_p6) target bundleno = 7340 (0x1cac), region = 68  ;;  %3295 = vperm.xlu0 (!%p3565_p6), %4142, %v3292_v36  }
0x1bbe   : > { %v3279_v33 = vadd.f32 %v3276_v10, %v3271_v38  ;;  %v3272_v56 = vadd.f32 %v3909_v14, %v4793_v31  ;;  %v3257_v21 = vpop.f32.mrb[67].mxu0  ;;  %v4184_v31 = vmov (!%p3565_p6), 0.0  }
0x1bbf   : > { %v3277_v23 = vadd.f32 %v3276_v10, %v3269_v62  ;;  %v3270_v55 = vadd.f32 %v3257_v21, %v4778_v44  ;;  %3910 = vmatprep.subr.bf16.mxu0 (!%p3565_p6), %v4184_v31  ;;  %3914 = vmatprep.mubr.msk.bf16.mxu0 (!%p3565_p6), %vm4185_vm8, %v4184_v31 }
0x1bc0   : > { %3283 = vst.msk [vmem:[#allocation2 + $0x10] sm:$0xff] %vm529_vm1, %v3279_v33  ;;  %v3280_v52 = vadd.f32 %v3276_v10, %v3272_v56 }
0x1bc1   : > { %3281 = vst.msk [vmem:[#allocation2] sm:$0xff] %vm529_vm1, %v3277_v23  ;;  %v3278_v45 = vadd.f32 %v3276_v10, %v3270_v55 }
0x1bc2   : > { %3284 = vst.msk [vmem:[#allocation2 + $0x18] sm:$0xff] %vm529_vm1, %v3280_v52  ;;  %v3291_v22 = vpack.c.bf16 (!%p3565_p6), %v3280_v52, %v3279_v33 }
0x1bc3   : > { %3282 = vst.msk [vmem:[#allocation2 + $0x8] sm:$0xff] %vm529_vm1, %v3278_v45  ;;  %v3290_v37 = vpack.c.bf16 (!%p3565_p6), %v3278_v45, %v3277_v23 }
0x1bc4   : > { %v3305_v58 = vsel %vm529_vm1, %v3291_v22, 0 }
0x1bc5   : > { %v3302_v44 = vsel %vm529_vm1, %v3290_v37, 0 }
0x1bc6   : > { %3911 = vmatpush3.bf16.xpose.msra.mxu0 %v3302_v44 }
0x1bc7   : > { %3912 = vmatprep.subr.bf16.mxu0 %v4184_v31 }
0x1bce   : > { %3913 = vmatpush3.bf16.xpose.msra.mxu0 %v3305_v58 }
0x1bd5   : > { %3915 = vmatmul.mubr.msk.bf16.vlgmr.msra.gmra.mrb[0].mxu0 %vm529_vm1, %v3289_v57 }
0x1c3c   : > { %v3296_v59 = vpop.permute.xlu0 %3295 }
0x1ca8   : > { %v3341_v54 = vpop.f32.mrb[0].mxu0 }
0x1ca9   : > { %v3342_v60 = vadd.f32 %v3341_v54, %v3296_v59  ;;  %v3916_v61 = vpop.f32.mrb[1].mxu0 }
0x1caa   : > { %v3344_v63 = vpop.f32.mrb[2].mxu0 }
0x1cab   : > { %3348 = vst.msk [vmem:[%s4873_s10] sm:$0xf] %vm3347_vm9, %v3342_v60  ;;  %v3917_v0 = vpop.f32.mrb[3].mxu0 }
0x1cac PF: > { %s20_s15 = sadd.s32 1, %s4165_s15   ;;  %s4878_s26 = sld [smem:[#allocation3_spill]] }
0x1cad   : > { %p17_p7 = scmp.ge.s32.totalorder %s20_s15, 4   ;;  %s4879_s13 = smov %s4161_s14 }
0x1caf   :  { %19 = sbr.rel (!%p17_p7) target bundleno = 2 (0x2), region = 119 }
0x1cb2   : > { %s4880_s14 = smov %s4878_s26 }

</bundles_post_ra>
